<compile_context>
chip_gen: v7x
topology: tpu7x:2x2x1
jax: 0.10.0
libtpu: 0.0.40
codegen_flags: <defaults>
</compile_context>

<pallas_src>
from typing import Any, NamedTuple, Optional

import jax
import jax.numpy as jnp
from jax.experimental import pallas as pl
from jax.experimental.pallas import tpu as pltpu


_LANE = 128


def _round_up(x, m):
    return ((x + m - 1) // m) * m


# ---------------------------------------------------------------------------
# Generation-aware hardware parameters.
# ---------------------------------------------------------------------------
def _tpu_params():
    """Returns (mxu_align, vmem_limit_bytes, resident_budget_bytes)."""
    vmem_cap = 64 * 1024 * 1024                       # conservative = v7x
    try:
        vmem_cap = int(pltpu.get_tpu_info().vmem_capacity_bytes)
    except Exception:
        pass
    try:
        kind = jax.devices()[0].device_kind.lower()
    except Exception:
        kind = ""
    # v5 MXU is 4x128x128 -> 128-alignment avoids over-padding; v6e/v7x are
    # 2x256x256 -> 256-alignment.
    mxu_align = 128 if "v5" in kind else 256
    # ~75% of physical VMEM as the scoped limit (96 MiB on 128 MiB parts,
    # 48 MiB on v7x 64 MiB parts); keep a margin of that for compiler scratch.
    vmem_limit = (vmem_cap * 3) // 4
    resident_budget = max(vmem_limit - 8 * 1024 * 1024, 16 * 1024 * 1024)
    return mxu_align, vmem_limit, resident_budget


# ---------------------------------------------------------------------------
# Cached per-graph plan (adj is fixed across GCN layers / training steps).
# ---------------------------------------------------------------------------
class GCNGraph(NamedTuple):
    adj_c: jax.Array                 # padded compute-dtype adjacency
    m: int                           # original row count
    k: int                           # original col count
    d_pad: int                       # padded embedding width
    path: str                        # "resident" | "blocksparse"
    tm: int
    tn: int
    tk: int
    vmem_limit: int
    compute_dtype: Any
    ids: Optional[jax.Array]         # (ni, nk) non-zero block ids (path 2)
    counts: Optional[jax.Array]      # (ni,) non-zero block counts (path 2)
    max_blocks: int


def prepare_gcn_graph(adj, latdim, *, compute_dtype=jnp.bfloat16,
                      out_itemsize=4, tm=None, tn=None, tk=None,
                      force_ktiled=False):
    """Hoisted per-graph work: bf16 cast + padding + path/tile selection and
    (if needed) block-sparsity metadata.  Call ONCE per graph and reuse the
    result for every GCNLayer.forward / training step."""
    M, K = adj.shape
    align, vmem_limit, resident_budget = _tpu_params()
    cb = jnp.dtype(compute_dtype).itemsize
    ob = out_itemsize
    d_pad_base = _round_up(latdim, _LANE)

    # ------------------------- resident path ------------------------------
    if not force_ktiled:
        tm_req = 512 if tm is None else tm
        tm_res = min(_round_up(tm_req, align), _round_up(M, align))
        if M > align:
            # >= 2 row tiles so both v7x TensorCores get work (a harmless
            # extra grid step on single-TC v5e/v6e).
            tm_res = min(tm_res, _round_up(-(-M // 2), align))
        K_pad = _round_up(K, align)
        emb_bytes = K_pad * d_pad_base * cb          # single-buffered slab

        def resident_bytes(t):
            # emb slab (1 buffer) + double-buffered adj row slab + out tiles.
            return emb_bytes + 2 * t * K_pad * cb + 2 * t * d_pad_base * ob

        # If only the adj row slab overshoots, shrink tm and stay resident
        # rather than paying the block-sparse path's embeds re-reads.
        while resident_bytes(tm_res) > resident_budget and tm_res > align:
            tm_res = max(align, _round_up(tm_res // 2, align))

        if resident_bytes(tm_res) <= resident_budget:
            M_pad = _round_up(M, tm_res)
            adj_c = adj.astype(compute_dtype)
            if (M_pad, K_pad) != (M, K):
                adj_c = jnp.pad(adj_c, ((0, M_pad - M), (0, K_pad - K)))
            return GCNGraph(adj_c, M, K, d_pad_base, "resident",
                            tm_res, d_pad_base, K_pad, vmem_limit,
                            compute_dtype, None, None, 0)

    # ------------------------ block-sparse path ---------------------------
    tn_sel = d_pad_base if tn is None else min(_round_up(tn, _LANE), d_pad_base)
    d_pad = _round_up(d_pad_base, tn_sel)
    # Finer tk => block skipping actually skips at realistic GCN sparsity.
    tk_sel = 256 if tk is None else tk
    tk_sel = min(_round_up(tk_sel, align), _round_up(K, align))
    # Larger tm amortizes the per-row-tile embeds re-read when D fits a tile.
    tm_sel = (1024 if d_pad <= tn_sel else 512) if tm is None else tm
    tm_sel = min(_round_up(tm_sel, align), _round_up(M, align))

    M_pad = _round_up(M, tm_sel)
    K_pad = _round_up(K, tk_sel)
    adj_c = adj.astype(compute_dtype)
    if (M_pad, K_pad) != (M, K):
        adj_c = jnp.pad(adj_c, ((0, M_pad - M), (0, K_pad - K)))

    ni, nk = M_pad // tm_sel, K_pad // tk_sel
    # For each row-tile, sorted k-indices of non-zero (tm, tk) blocks, padded
    # by repeating the last valid id (repeated block index -> no extra DMA).
    # TODO(synk): with a real CSR/COO adjacency, build nz/counts/ids from the
    # sparse indices instead of scanning a dense matrix, and move toward a
    # gathered-row spmm.
    nz = (adj_c.reshape(ni, tm_sel, nk, tk_sel) != 0).any(axis=(1, 3))   # (ni, nk)
    counts = nz.sum(axis=1).astype(jnp.int32)
    order = jnp.argsort(~nz, axis=1, stable=True).astype(jnp.int32)      # nz first
    pos = jnp.arange(nk, dtype=jnp.int32)[None, :]
    clamped = jnp.minimum(pos, jnp.maximum(counts[:, None] - 1, 0))
    ids = jnp.take_along_axis(order, clamped, axis=1)                    # (ni, nk)
    max_blocks = max(int(jnp.max(counts)), 1)   # one-off host sync, per graph

    return GCNGraph(adj_c, M, K, d_pad, "blocksparse",
                    tm_sel, tn_sel, tk_sel, vmem_limit,
                    compute_dtype, ids, counts, max_blocks)


# ---------------------------------------------------------------------------
# Path 1: embeds VMEM-resident, single streaming pass over adj.
# ---------------------------------------------------------------------------
def _resident_kernel(adj_ref, emb_ref, out_ref):
    out_ref[...] = jnp.dot(
        adj_ref[...], emb_ref[...], preferred_element_type=jnp.float32
    ).astype(out_ref.dtype)


def _spmm_resident(adj_c, emb_c, out_dtype, tm, vmem_limit, single_buffer_embeds):
    M_pad, K_pad = adj_c.shape
    _, D_pad = emb_c.shape
    emb_kwargs = {}
    if single_buffer_embeds:
        # Constant index_map: the slab is DMA'd once; a second pipeline buffer
        # would only waste K_pad * D_pad bytes of VMEM.
        emb_kwargs["pipeline_mode"] = pl.Buffered(1)
    return pl.pallas_call(
        _resident_kernel,
        out_shape=jax.ShapeDtypeStruct((M_pad, D_pad), out_dtype),
        grid_spec=pltpu.PrefetchScalarGridSpec(
            num_scalar_prefetch=0,
            grid=(M_pad // tm,),
            in_specs=[
                # adj row slab streams at the default depth-2 pipeline; prefer
                # a larger tm over deeper buffering (VMEM is the scarce thing).
                pl.BlockSpec((tm, K_pad), lambda i: (i, 0)),
                pl.BlockSpec((K_pad, D_pad), lambda i: (0, 0), **emb_kwargs),
            ],
            out_specs=pl.BlockSpec((tm, D_pad), lambda i: (i, 0)),
        ),
        compiler_params=pltpu.CompilerParams(
            dimension_semantics=("parallel",),   # row tiles shard across v7x TCs
            vmem_limit_bytes=vmem_limit,
        ),
    )(adj_c, emb_c)


# ---------------------------------------------------------------------------
# Path 2: block-skipping k-tiled spmm via scalar prefetch.
# ---------------------------------------------------------------------------
def _blocksparse_kernel(ids_ref, counts_ref, adj_ref, emb_ref, out_ref, acc_ref):
    i = pl.program_id(0)
    s = pl.program_id(2)

    @pl.when(s == 0)
    def _():
        acc_ref[...] = jnp.zeros_like(acc_ref)

    # Only multiply blocks that actually contain non-zeros.
    @pl.when(s < counts_ref[i])
    def _():
        acc_ref[...] += jnp.dot(
            adj_ref[...], emb_ref[...], preferred_element_type=jnp.float32
        )

    @pl.when(s == pl.num_programs(2) - 1)
    def _():
        out_ref[...] = acc_ref[...].astype(out_ref.dtype)


def _spmm_blocksparse(adj_c, emb_c, ids, counts, max_blocks, out_dtype,
                      tm, tn, tk, vmem_limit):
    M_pad, K_pad = adj_c.shape
    _, D_pad = emb_c.shape
    ni, nj = M_pad // tm, D_pad // tn
    return pl.pallas_call(
        _blocksparse_kernel,
        out_shape=jax.ShapeDtypeStruct((M_pad, D_pad), out_dtype),
        grid_spec=pltpu.PrefetchScalarGridSpec(
            num_scalar_prefetch=2,
            grid=(ni, nj, max_blocks),
            in_specs=[
                pl.BlockSpec((tm, tk), lambda i, j, s, id_r, cnt_r: (i, id_r[i, s])),
                pl.BlockSpec((tk, tn), lambda i, j, s, id_r, cnt_r: (id_r[i, s], j)),
            ],
            out_specs=pl.BlockSpec((tm, tn), lambda i, j, s, id_r, cnt_r: (i, j)),
            scratch_shapes=[pltpu.VMEM((tm, tn), jnp.float32)],
        ),
        compiler_params=pltpu.CompilerParams(
            # TODO(synk): on v7x, interleave dense/sparse row tiles along i so
            # both TensorCores get balanced counts (max_blocks is set by the
            # densest row tile).
            dimension_semantics=("parallel", "parallel", "arbitrary"),
            vmem_limit_bytes=vmem_limit,
        ),
    )(ids, counts, adj_c, emb_c)


# ---------------------------------------------------------------------------
# Module forward
# ---------------------------------------------------------------------------
def gcn_layer_forward(graph, embeds, *, out_dtype=None, embeds_compute_dtype=None):
    """Pallas implementation of GCNLayer.forward: adj @ embeds (spmm).

    `graph` is a GCNGraph from prepare_gcn_graph (preferred — the per-graph
    cast/pad/metadata work is amortized across layers) or a raw dense (N, N)
    adjacency array (prepared on the fly, slow path)."""
    if not isinstance(graph, GCNGraph):
        graph = prepare_gcn_graph(graph, embeds.shape[-1])

    K2, D = embeds.shape
    assert K2 == graph.k, "adj/embeds shape mismatch"
    assert D <= graph.d_pad, "embeds wider than prepared graph plan"
    if out_dtype is None:
        out_dtype = embeds.dtype

    cdt = graph.compute_dtype if embeds_compute_dtype is None else embeds_compute_dtype
    emb_c = embeds.astype(cdt)
    K_pad = graph.adj_c.shape[1]
    D_pad = graph.d_pad
    if (K_pad, D_pad) != (K2, D):
        emb_c = jnp.pad(emb_c, ((0, K_pad - K2), (0, D_pad - D)))

    if graph.path == "resident":
        try:
            out = _spmm_resident(graph.adj_c, emb_c, out_dtype, graph.tm,
                                 graph.vmem_limit, single_buffer_embeds=True)
        except Exception:
            # pipeline_mode=pl.Buffered(1) unsupported on this jax version;
            # fall back to the default depth-2 pipeline for the resident slab.
            out = _spmm_resident(graph.adj_c, emb_c, out_dtype, graph.tm,
                                 graph.vmem_limit, single_buffer_embeds=False)
    else:
        out = _spmm_blocksparse(graph.adj_c, emb_c, graph.ids, graph.counts,
                                graph.max_blocks, out_dtype,
                                graph.tm, graph.tn, graph.tk, graph.vmem_limit)

    if out.shape != (graph.m, D):
        out = out[:graph.m, :D]
    return out


def xavier_uniform(key, shape, dtype=jnp.float32):
    # nn.init.xavier_uniform_ for a 2D (fan_out, fan_in) weight.
    fan_in, fan_out = shape[1], shape[0]
    limit = (6.0 / (fan_in + fan_out)) ** 0.5
    return jax.random.uniform(key, shape, dtype, minval=-limit, maxval=limit)


if __name__ == "__main__":
    key = jax.random.PRNGKey(0)
    k_w, k_adj, k_emb = jax.random.split(key, 3)

    n_nodes = 512   # number of graph nodes
    latdim = 128    # embedding dimension

    # Module parameter (initialized as in __init__, unused in forward).
    W = xavier_uniform(k_w, (latdim, latdim))

    # Synthetic normalized adjacency (dense stand-in for the sparse adj):
    # ~90% sparse, with a block-structured zero region so the block-skipping
    # path actually skips work, then row-normalized as in GCN.
    adj_dense = jax.random.uniform(k_adj, (n_nodes, n_nodes), jnp.float32)
    adj_dense = jnp.where(adj_dense > 0.9, adj_dense, 0.0)
    adj_dense = adj_dense.at[: n_nodes // 2, n_nodes // 2:].set(0.0)
    row_sum = jnp.maximum(adj_dense.sum(axis=1, keepdims=True), 1e-6)
    adj = adj_dense / row_sum

    embeds = jax.random.normal(k_emb, (n_nodes, latdim), jnp.float32)

    # Per-graph prep (bf16 cast + pad + path/tile choice + metadata) done ONCE
    # and reused across layers / steps.
    graph = prepare_gcn_graph(adj, latdim)                                   # resident path
    graph_bs = prepare_gcn_graph(adj, latdim, force_ktiled=True, tm=256, tk=128)  # coverage

    out_resident = jax.block_until_ready(gcn_layer_forward(graph, embeds))
    out_ktiled = jax.block_until_ready(gcn_layer_forward(graph_bs, embeds))

    # Stacked GCN layers reuse the same prepared graph (no repeated N^2 pass).
    out_layer2 = jax.block_until_ready(gcn_layer_forward(graph, out_resident))

    assert out_resident.shape == (n_nodes, latdim)
    assert out_ktiled.shape == (n_nodes, latdim)
    assert out_layer2.shape == (n_nodes, latdim)

    # Reference with matching bf16-operand / f32-accumulate math, plus a
    # semantic check against the full f32 spmm (bf16 adj -> ~1e-2 rel error).
    ref_bf16 = jnp.dot(adj.astype(jnp.bfloat16), embeds.astype(jnp.bfloat16),
                       preferred_element_type=jnp.float32)
    ref_f32 = adj @ embeds

    assert jnp.allclose(out_resident, ref_bf16, atol=1e-2, rtol=1e-2)
    assert jnp.allclose(out_ktiled, ref_bf16, atol=1e-2, rtol=1e-2)
    assert jnp.allclose(out_resident, ref_f32, atol=5e-2, rtol=5e-2)

    print("KERNEL_OK")
</pallas_src>

<mosaic_0001>
module attributes {stable_mosaic.version = 11 : i64} {
  func.func @_resident_kernel(%arg0: i32, %arg1: memref<256x512xbf16, #tpu.memory_space<vmem>>, %arg2: memref<512x128xbf16, #tpu.memory_space<vmem>>, %arg3: memref<256x128xf32, #tpu.memory_space<vmem>>) attributes {dimension_semantics = [#tpu.dimension_semantics<parallel>], iteration_bounds = array<i64: 2>, scalar_prefetch = 0 : i64, scratch_operands = 0 : i64, tpu.core_type = #tpu.core_type<tc>, window_params = [{transform_indices = @transform_0, window_bounds = array<i64: 256, 512>}, {pipeline_mode = #tpu.pipeline_mode<synchronous>, transform_indices = @transform_1, window_bounds = array<i64: 512, 128>}, {transform_indices = @transform_2, window_bounds = array<i64: 256, 128>}]} {
    %c0 = arith.constant 0 : index
    %c0_0 = arith.constant 0 : index
    %0 = vector.load %arg1[%c0, %c0_0] : memref<256x512xbf16, #tpu.memory_space<vmem>>, vector<256x512xbf16>
    %c0_1 = arith.constant 0 : index
    %c0_2 = arith.constant 0 : index
    %1 = vector.load %arg2[%c0_1, %c0_2] : memref<512x128xbf16, #tpu.memory_space<vmem>>, vector<512x128xbf16>
    %cst = arith.constant dense<0.000000e+00> : vector<256x128xf32>
    %2 = tpu.matmul %0, %1, %cst {dimension_numbers = #tpu.dot_dimension_numbers<[1], [0], [0], [1], [0, 0, 1, 1], [], []>} : vector<256x512xbf16>, vector<512x128xbf16>, vector<256x128xf32> -> vector<256x128xf32>
    %c0_3 = arith.constant 0 : index
    %c0_4 = arith.constant 0 : index
    %3 = vector.load %arg3[%c0_3, %c0_4] : memref<256x128xf32, #tpu.memory_space<vmem>>, vector<256x128xf32>
    tpu.vector_store %arg3[%c0_3, %c0_4], %2 {strides = array<i32>} : memref<256x128xf32, #tpu.memory_space<vmem>>, vector<256x128xf32>,
    return
  }
  func.func @transform_0(%arg0: i32) -> (i32, i32) {
    %c0_i32 = arith.constant 0 : i32
    %c0_i32_0 = arith.constant 0 : i32
    return %arg0, %c0_i32 : i32, i32
  }
  func.func @transform_1(%arg0: i32) -> (i32, i32) {
    %c0_i32 = arith.constant 0 : i32
    %c0_i32_0 = arith.constant 0 : i32
    %c0_i32_1 = arith.constant 0 : i32
    return %c0_i32, %c0_i32_0 : i32, i32
  }
  func.func @transform_2(%arg0: i32) -> (i32, i32) {
    %c0_i32 = arith.constant 0 : i32
    %c0_i32_0 = arith.constant 0 : i32
    return %arg0, %c0_i32 : i32, i32
  }
}

module attributes {stable_mosaic.version = 11 : i64} {
  func.func @_resident_kernel(%arg0: i32, %arg1: memref<256x512xbf16, #tpu.memory_space<vmem>>, %arg2: memref<512x128xbf16, #tpu.memory_space<vmem>>, %arg3: memref<256x128xf32, #tpu.memory_space<vmem>>) attributes {dimension_semantics = [#tpu.dimension_semantics<parallel>], iteration_bounds = array<i64: 2>, scalar_prefetch = 0 : i64, scratch_operands = 0 : i64, tpu.core_type = #tpu.core_type<tc>, window_params = [{transform_indices = @transform_0, window_bounds = array<i64: 256, 512>}, {pipeline_mode = #tpu.pipeline_mode<synchronous>, transform_indices = @transform_1, window_bounds = array<i64: 512, 128>}, {transform_indices = @transform_2, window_bounds = array<i64: 256, 128>}]} {
    %c0 = arith.constant 0 : index
    %c0_0 = arith.constant 0 : index
    %0 = vector.load %arg1[%c0, %c0_0] : memref<256x512xbf16, #tpu.memory_space<vmem>>, vector<256x512xbf16>
    %c0_1 = arith.constant 0 : index
    %c0_2 = arith.constant 0 : index
    %1 = vector.load %arg2[%c0_1, %c0_2] : memref<512x128xbf16, #tpu.memory_space<vmem>>, vector<512x128xbf16>
    %cst = arith.constant dense<0.000000e+00> : vector<256x128xf32>
    %2 = tpu.matmul %0, %1, %cst {dimension_numbers = #tpu.dot_dimension_numbers<[1], [0], [0], [1], [0, 0, 1, 1], [], []>} : vector<256x512xbf16>, vector<512x128xbf16>, vector<256x128xf32> -> vector<256x128xf32>
    %c0_3 = arith.constant 0 : index
    %c0_4 = arith.constant 0 : index
    %3 = vector.load %arg3[%c0_3, %c0_4] : memref<256x128xf32, #tpu.memory_space<vmem>>, vector<256x128xf32>
    tpu.vector_store %arg3[%c0_3, %c0_4], %2 {strides = array<i32>} : memref<256x128xf32, #tpu.memory_space<vmem>>, vector<256x128xf32>,
    return
  }
  func.func @transform_0(%arg0: i32) -> (i32, i32) {
    %c0_i32 = arith.constant 0 : i32
    %c0_i32_0 = arith.constant 0 : i32
    return %arg0, %c0_i32 : i32, i32
  }
  func.func @transform_1(%arg0: i32) -> (i32, i32) {
    %c0_i32 = arith.constant 0 : i32
    %c0_i32_0 = arith.constant 0 : i32
    %c0_i32_1 = arith.constant 0 : i32
    return %c0_i32, %c0_i32_0 : i32, i32
  }
  func.func @transform_2(%arg0: i32) -> (i32, i32) {
    %c0_i32 = arith.constant 0 : i32
    %c0_i32_0 = arith.constant 0 : i32
    return %arg0, %c0_i32 : i32, i32
  }
}

</mosaic_0001>

<bundles_post_ra>
// kernel: tpu_custom_call.1
= control target key start
LH: loop header
LB: loop body
LE: loop exit
PB: predicated region body
PF: predicated region fallthrough
CT: control target
= control target key end

     0   :  { %7 = vsyncpa [#allocation3], 0  ;;  %s2260_s0 = inlined_call_operand.hbm [shape: bf16[512,512], index: 0, kind: input, shape index: {}]   ;;  %s2261_s1 = inlined_call_operand.hbm [shape: bf16[512,128], index: 1, kind: input, shape index: {}]   ;;  %s2262_s2 = inlined_call_operand.hbm [shape: f32[512,128], index: 2, kind: output, shape index: {}]  }
   0x1   :  { %9 = vsyncpa [#allocation3 + $0x1], 0 }
   0x2   :  { %10 = vsyncpa [#allocation6], 0 }
   0x3   :  { %11 = vsyncpa [#allocation4], 0 }
   0x4   :  { %13 = vsyncpa [#allocation4 + $0x1], 0  ;;  %s1957_s9 = smov 0   ;;  %s1959_s10 = smov 0  }
   0x5   :  { %s1961_s11 = smov 0   ;;  %s1963_s12 = smov 0  }
   0x6 LB: > { %s1978_s13 = sadd.s32 4294967295, %s1931_s12   ;;  %s1272_s14 = sadd.s32 4294967294, %s1931_s12   ;;  %s1931_s12 = sphi %s1963_s12, %s2282_s12   ;;  %s1927_s11 = sphi %s1961_s11, %s2281_s11   ;;  %s1923_s10 = sphi %s1959_s10, %s2280_s10   ;;  %s1919_s9 = sphi %s1957_s9, %s2279_s9  }
   0x7   : > { %p39_p0 = scmp.ne.s32.totalorder %s1923_s10, %s1919_s9  ;;  %p2263_p1 = scmp.eq.s32.totalorder %s1978_s13, 0 }
   0x8   : > { %p90_p3 = scmp.eq.s32.totalorder %s1272_s14, 1  ;;  %p1273_p5 = scmp.ge.s32.totalorder %s1931_s12, 1 }
   0x9   : > { %p1987_p4 = por %p2263_p1, %p39_p0  ;;  %p97_p7 = scmp.lt.s32.totalorder %s1931_s12, 3 }
   0xa   : > { %p1992_p6 = por %p90_p3, %p39_p0  ;;  %s1933_s18 = smov [#allocation5]  }
   0xb   : > { %s2266_s15 = scalar_select %p1987_p4, 1, 0 }
   0xc   : > { %s2267_s16 = scalar_select %p1992_p6, 1, 0 }
   0xd   : > { %p1997_p8 = pnand %p1273_p5, %p97_p7  ;;  %s109_s19 = sshll.u32 %s1933_s18, 4  ;;  %s2001_s19 = int_to_ptr.vmem [resolvable:$true] %s109_s19 }
   0xe   : > { %s2013_s21 = sadd.s32 1, %s1931_s12   ;;  %s26_s22 = sadd.s32 1, %s1927_s11 }
   0xf   : > { %s2268_s17 = scalar_select %p1997_p8, 1, 0 }
  0x10   : > { %p1620_p9 = pneg %p1997_p8  ;;  %s23_s23 = ssub.s32 %s1931_s12, %s2013_s21 }
  0x11   : > { %s1803_s26 = scalar_lea.hbm %s2261_s1, 4096 }
  0x12   : > { %p2008_p11 = pnand %p1620_p9, %p2263_p1  ;;  %p1804_p12 = scmp.ne.s32.totalorder %s2261_s1, %s1803_s26 }
  0x13   : > { %p1810_p5 = scmp.lt.u32.totalorder %s1803_s26, %s2261_s1 }
  0x14   : > { %p1805_p13 = pneg %p2008_p11 }
  0x16   : > { %p1806_p0 = pnand %p1805_p13, %p1804_p12 }
  0x18   : > { %p1807_p3 = pneg %p1806_p0 }
  0x1a   : > { %p1812_p7 = pnand %p1810_p5, %p1807_p3 }
  0x1c   : > { %1815 = shalt.err (!%p1812_p7)
}
  0x1d   : > { %s1816_s3 = scalar_lea.vmem %s2001_s19, 4096  ;;  %p1824_p2 = scmp.lt.s32.totalorder %s2001_s19, %s2001_s19 }
  0x1e   : > { %p1817_p9 = scmp.ne.s32.totalorder %s2001_s19, %s1816_s3  ;;  %p1825_p6 = scmp.lt.s32.totalorder %s1816_s3, %s1816_s3 }
  0x20   : > { %p1819_p10 = pnand %p1817_p9, %p1805_p13  ;;  %p1826_p4 = por %p1825_p6, %p1824_p2 }
  0x22   : > { %p1820_p1 = pneg %p1819_p10 }
  0x24   : > { %p1827_p8 = pnand %p1826_p4, %p1820_p1 }
  0x26   : > { %1830 = shalt.err (!%p1827_p8)
}
  0x27   : > { %s1934_s4 = smov 64   ;;  %s1935_s5 = smov 4  }
  0x28   : > { %1623 = dma.hbm_to_vmem [thread:$0]  (!%p2008_p11), %s2261_s1, 4096, %s2001_s19, [#allocation6], %s1934_s4, %s1934_s4, %s1935_s5  }
  0x29   : > { %p24_p2 = scmp.eq.s32.totalorder %s23_s23, 0  ;;  %p33_p1 = scmp.ne.s32.totalorder %s1927_s11, %s1923_s10 }
  0x2a   : > { %p34_p4 = scmp.eq.s32.totalorder %s1931_s12, 0  ;;  %p1633_p6 = scmp.lt.s32.totalorder %s1931_s12, 2 }
  0x2b   : > { %s2044_s8 = scalar_select %p24_p2, %s1927_s11, %s26_s22  }
  0x2c   : > { %p35_p8 = por %p34_p4, %p33_p1  ;;  %p2270_p10 = scmp.eq.s32.totalorder %s1978_s13, 1 }
  0x2d   : > { %s123_s18 = sand.u32 1, %s1927_s11   ;;  %s1386_s24 = sshll.u32 %s1931_s12, 13 }
  0x2e   : > { %p2048_p12 = por %p2270_p10, %p33_p1  ;;  %s1276_s25 = sshll.u32 %s123_s18, 9 }
  0x2f   : > { %s2057_s27 = scalar_lea.hbm %s2260_s0, %s1386_s24  ;;  %s127_s19 = scalar_lea.vmem [#allocation2], %s1276_s25 }
  0x30   : > { %s135_s22 = sshll.u32 %s127_s19, 4  ;;  %p2059_p11 = pnand %p1633_p6, %p35_p8  ;;  %s2063_s22 = int_to_ptr.vmem [resolvable:$true] %s135_s22 }
  0x31   : > { %s2065_s28 = scalar_lea.sflag [#allocation3], %s123_s18  ;;  %s1831_s29 = scalar_lea.hbm %s2057_s27, 8192 }
  0x32   : > { %p1832_p13 = scmp.ne.s32.totalorder %s2057_s27, %s1831_s29  ;;  %p1833_p0 = pneg %p2059_p11 }
  0x33   : > { %s1836_s4 = scalar_lea.hbm %s2260_s0, 16384  ;;  %p1837_p7 = scmp.lt.u32.totalorder %s2057_s27, %s2260_s0 }
  0x34   : > { %p1834_p3 = pnand %p1833_p0, %p1832_p13  ;;  %p1838_p9 = scmp.lt.u32.totalorder %s1836_s4, %s1831_s29 }
  0x35   : > { %p1840_p1 = scmp.lt.u32.totalorder %s1831_s29, %s2057_s27 }
  0x36   : > { %p1835_p5 = pneg %p1834_p3  ;;  %p1839_p2 = por %p1838_p9, %p1837_p7 }
  0x38   : > { %p1841_p4 = por %p1840_p1, %p1839_p2 }
  0x3a   : > { %p1842_p6 = pnand %p1841_p4, %p1835_p5 }
  0x3c   : > { %1845 = shalt.err (!%p1842_p6)
}
  0x3d   : > { %s1846_s7 = scalar_lea.vmem %s2063_s22, 8192  ;;  %s1936_s18 = smov [#allocation2]  }
  0x3e   : > { %p1847_p8 = scmp.ne.s32.totalorder %s2063_s22, %s1846_s7  ;;  %s1851_s24 = sshll.u32 %s1936_s18, 4  ;;  %s1852_s24 = int_to_ptr.vmem [resolvable:$false] %s1851_s24 }
  0x3f   : > { %s1853_s25 = scalar_lea.vmem %s1852_s24, 16384  ;;  %p1854_p3 = scmp.lt.s32.totalorder %s2063_s22, %s1852_s24 }
  0x40   : > { %p1849_p10 = pnand %p1847_p8, %p1833_p0  ;;  %p1855_p7 = scmp.lt.s32.totalorder %s1853_s25, %s1846_s7 }
  0x42   : > { %p1850_p13 = pneg %p1849_p10  ;;  %p1856_p9 = por %p1855_p7, %p1854_p3 }
  0x44   : > { %p1857_p2 = pnand %p1856_p9, %p1850_p13 }
  0x46   : > { %1860 = shalt.err (!%p1857_p2)
}
  0x47   : > { %s1937_s20 = smov 256   ;;  %s1938_s26 = smov 16  }
  0x48   : > { %1627 = dma.hbm_to_vmem [thread:$0]  (!%p2059_p11), %s2057_s27, 8192, %s2063_s22, %s2065_s28, %s1937_s20, %s1937_s20, %s1938_s26  }
  0x49   : > { %p2273_p0 = scmp.ne.s32.totalorder %s2268_s17, 0 }
  0x4a   : > { %s2096_s19 = sand.u32 (!%p2273_p0), 1, %s1923_s10   ;;  %p2274_p5 = scmp.ne.s32.totalorder (!%p2273_p0), %s2266_s15, 0 }
  0x4b   : > { %147 = sbr.rel (%p2273_p0) target bundleno = 475 (0x1db), region = 28  ;;  %s1281_s29 = sshll.u32 (!%p2273_p0), %s2096_s19, 9 }
  0x4c   : > { %s150_s30 = scalar_lea.sflag (!%p2273_p0), [#allocation3], %s2096_s19  ;;  %s2100_s3 = scalar_lea.vmem (!%p2273_p0), [#allocation2], %s1281_s29 }
  0x52   : > { %1906 = dma.done.wait (%p2274_p5), %s150_s30, 8192  }
  0x53   : > { %1908 = vsyncadd (%p2274_p5), %s150_s30, 4294959104  ;;  %p2275_p11 = scmp.eq.s32.totalorder %s1978_s13, 0 }
  0x55   : > { %1910 = dma.done.wait (%p2275_p11), [#allocation6], 4096   ;;  %p2276_p1 = pmov %p2275_p11 }
  0x56   : > { %v1675_v0 = vld [vmem:[#allocation5 + $0x40] sm:$0xff]   ;;  %v1679_v4 = vld [vmem:[#allocation5 + $0x48] sm:$0xff]   ;;  %v1683_v8 = vld [vmem:[#allocation5 + $0x50] sm:$0xff]   ;;  %s1283_s15 = sshll.u32 %s2096_s19, 8  ;;  %s1387_s27 = sshll.u32 %s1978_s13, 12 }
  0x57   : > { %1912 = vsyncadd (%p2276_p1), [#allocation6], 4294963200  ;;  %v1676_v1 = vld [vmem:[#allocation5 + $0xc0] sm:$0xff]   ;;  %1388 = vmatprep.subr.bf16.mxu0 %v1675_v0  ;;  %v1680_v5 = vld [vmem:[#allocation5 + $0xc8] sm:$0xff]   ;;  %s2175_s17 = scalar_lea.vmem [#allocation7], %s1283_s15  ;;  %s2212_s4 = scalar_lea.hbm %s2262_s2, %s1387_s27 }
  0x58   : > { %v1677_v2 = vld [vmem:[#allocation5] sm:$0xff]   ;;  %1500 = vmatprep.subr.bf16.mxu1 %v1676_v1  ;;  %v1681_v6 = vld [vmem:[#allocation5 + $0x8] sm:$0xff]   ;;  %v1684_v9 = vld [vmem:[#allocation5 + $0xd0] sm:$0xff]   ;;  %s1189_s22 = sshll.u32 %s2175_s17, 4  ;;  %s1176_s5 = scalar_lea.sflag [#allocation4], %s2096_s19  ;;  %s2214_s22 = int_to_ptr.vmem [resolvable:$true] %s1189_s22 }
  0x59   : > { %v1678_v3 = vld [vmem:[#allocation5 + $0x80] sm:$0xff]   ;;  %1389 = vmatpush3.bf16.msra.mxu0 %v1677_v2  ;;  %v1682_v7 = vld [vmem:[#allocation5 + $0x88] sm:$0xff]   ;;  %v1685_v10 = vld [vmem:[#allocation5 + $0x10] sm:$0xff]   ;;  %s1861_s13 = scalar_lea.vmem %s2214_s22, 4096  ;;  %s1939_s6 = smov [#allocation7]  }
  0x5a   : > { %1501 = vmatpush3.bf16.msra.mxu1 %v1678_v3  ;;  %1390 = vmatprep.subr.bf16.mxu0 %v1679_v4  ;;  %v1686_v11 = vld [vmem:[#allocation5 + $0x90] sm:$0xff]   ;;  %v1687_v12 = vld [vmem:[#allocation5 + $0x58] sm:$0xff]   ;;  %v1691_v16 = vld [vmem:[#allocation5 + $0x60] sm:$0xff]   ;;  %p1862_p4 = scmp.ne.s32.totalorder %s2214_s22, %s1861_s13  ;;  %s1865_s7 = sshll.u32 %s1939_s6, 4  ;;  %s1866_s7 = int_to_ptr.vmem [resolvable:$false] %s1865_s7 }
  0x5b   : > { %1502 = vmatprep.subr.bf16.mxu1 %v1680_v5  ;;  %v1688_v13 = vld [vmem:[#allocation5 + $0xd8] sm:$0xff]   ;;  %v1692_v17 = vld [vmem:[#allocation5 + $0xe0] sm:$0xff]   ;;  %v1695_v20 = vld [vmem:[#allocation5 + $0x68] sm:$0xff]   ;;  %s1867_s18 = scalar_lea.vmem %s1866_s7, 8192  ;;  %p1868_p10 = scmp.lt.s32.totalorder %s2214_s22, %s1866_s7 }
  0x5c   : > { %v1689_v14 = vld [vmem:[#allocation5 + $0x18] sm:$0xff]   ;;  %v1693_v18 = vld [vmem:[#allocation5 + $0x20] sm:$0xff]   ;;  %v1696_v21 = vld [vmem:[#allocation5 + $0xe8] sm:$0xff]   ;;  %p1863_p6 = pnand %p1862_p4, %p2048_p12  ;;  %p1869_p13 = scmp.lt.s32.totalorder %s1867_s18, %s1861_s13 }
  0x5d   : > { %1391 = vmatpush3.bf16.msra.mxu0 %v1681_v6  ;;  %v1690_v15 = vld [vmem:[#allocation5 + $0x98] sm:$0xff]   ;;  %v1694_v19 = vld [vmem:[#allocation5 + $0xa0] sm:$0xff]   ;;  %v1697_v22 = vld [vmem:[#allocation5 + $0x28] sm:$0xff]  }
  0x5e   : > { %1503 = vmatpush3.bf16.msra.mxu1 %v1682_v7  ;;  %1392 = vmatprep.subr.bf16.mxu0 %v1683_v8  ;;  %v1698_v23 = vld [vmem:[#allocation5 + $0xa8] sm:$0xff]   ;;  %v1699_v24 = vld [vmem:[#allocation5 + $0x70] sm:$0xff]   ;;  %v1703_v28 = vld [vmem:[#allocation5 + $0x78] sm:$0xff]   ;;  %p1864_p8 = pneg %p1863_p6  ;;  %p1870_p3 = por %p1869_p13, %p1868_p10 }
  0x5f   : > { %1504 = vmatprep.subr.bf16.mxu1 %v1684_v9  ;;  %v1700_v25 = vld [vmem:[#allocation5 + $0xf0] sm:$0xff]   ;;  %v1704_v29 = vld [vmem:[#allocation5 + $0xf8] sm:$0xff]  }
  0x60   : > { %v1701_v26 = vld [vmem:[#allocation5 + $0x30] sm:$0xff]   ;;  %v1705_v30 = vld [vmem:[#allocation5 + $0x38] sm:$0xff]   ;;  %p1871_p7 = pnand %p1870_p3, %p1864_p8 }
  0x61   : > { %1393 = vmatpush3.bf16.msra.mxu0 %v1685_v10  ;;  %v1702_v27 = vld [vmem:[#allocation5 + $0xb0] sm:$0xff]   ;;  %v1706_v31 = vld [vmem:[#allocation5 + $0xb8] sm:$0xff]  }
  0x62   : > { %1505 = vmatpush3.bf16.msra.mxu1 %v1686_v11  ;;  %1394 = vmatprep.subr.bf16.mxu0 %v1687_v12  ;;  %v1707_v32 = vld [vmem:[%s2100_s3] ss:$16 sps:$4 sm:$0xff]   ;;  %v1709_v33 = vld [vmem:[%s2100_s3 + $0x4] ss:$16 sps:$4 sm:$0xff]   ;;  %v1710_v34 = vld [vmem:[%s2100_s3 + $0x8] ss:$16 sps:$4 sm:$0xff]  }
  0x63   : > { %1506 = vmatprep.subr.bf16.mxu1 %v1688_v13  ;;  %v1712_v35 = vld [vmem:[%s2100_s3 + $0xc] ss:$16 sps:$4 sm:$0xff]   ;;  %853 = vmatprep.mubr.bf16.mxu0 %v1709_v33  ;;  %v1713_v36 = vld [vmem:[%s2100_s3 + $0x24] ss:$16 sps:$4 sm:$0xff]   ;;  %v1717_v38 = vld [vmem:[%s2100_s3 + $0x20] ss:$16 sps:$4 sm:$0xff]  }
  0x64   : > { %1014 = vmatprep.mubr.bf16.mxu1 %v1712_v35  ;;  %v1715_v37 = vld [vmem:[%s2100_s3 + $0x2c] ss:$16 sps:$4 sm:$0xff]   ;;  %v1718_v39 = vld [vmem:[%s2100_s3 + $0x28] ss:$16 sps:$4 sm:$0xff]   ;;  %v1719_v40 = vld [vmem:[%s2100_s3 + $0x44] ss:$16 sps:$4 sm:$0xff]  }
  0x65   : > { %1395 = vmatpush3.bf16.msra.mxu0 %v1689_v14  ;;  %v1721_v41 = vld [vmem:[%s2100_s3 + $0x4c] ss:$16 sps:$4 sm:$0xff]   ;;  %v1723_v42 = vld [vmem:[%s2100_s3 + $0x40] ss:$16 sps:$4 sm:$0xff]   ;;  %v1724_v43 = vld [vmem:[%s2100_s3 + $0x48] ss:$16 sps:$4 sm:$0xff]  }
  0x66   : > { %1507 = vmatpush3.bf16.msra.mxu1 %v1690_v15  ;;  %1396 = vmatprep.subr.bf16.mxu0 %v1691_v16  ;;  %v1725_v44 = vld [vmem:[%s2100_s3 + $0x64] ss:$16 sps:$4 sm:$0xff]   ;;  %v1727_v45 = vld [vmem:[%s2100_s3 + $0x6c] ss:$16 sps:$4 sm:$0xff]   ;;  %v1729_v46 = vld [vmem:[%s2100_s3 + $0x60] ss:$16 sps:$4 sm:$0xff]  }
  0x67   : > { %1508 = vmatprep.subr.bf16.mxu1 %v1692_v17  ;;  %v1730_v47 = vld [vmem:[%s2100_s3 + $0x68] ss:$16 sps:$4 sm:$0xff]   ;;  %v1731_v48 = vld [vmem:[%s2100_s3 + $0x84] ss:$16 sps:$4 sm:$0xff]   ;;  %v1733_v49 = vld [vmem:[%s2100_s3 + $0x8c] ss:$16 sps:$4 sm:$0xff]  }
  0x68   : > { %v1735_v50 = vld [vmem:[%s2100_s3 + $0x80] ss:$16 sps:$4 sm:$0xff]   ;;  %v1736_v51 = vld [vmem:[%s2100_s3 + $0x88] ss:$16 sps:$4 sm:$0xff]   ;;  %v1737_v52 = vld [vmem:[%s2100_s3 + $0xa4] ss:$16 sps:$4 sm:$0xff]  }
  0x69   : > { %1397 = vmatpush3.bf16.msra.mxu0 %v1693_v18  ;;  %v1739_v53 = vld [vmem:[%s2100_s3 + $0xac] ss:$16 sps:$4 sm:$0xff]   ;;  %v1741_v54 = vld [vmem:[%s2100_s3 + $0xa0] ss:$16 sps:$4 sm:$0xff]   ;;  %v1742_v55 = vld [vmem:[%s2100_s3 + $0xa8] ss:$16 sps:$4 sm:$0xff]  }
  0x6a   : > { %1509 = vmatpush3.bf16.msra.mxu1 %v1694_v19  ;;  %1398 = vmatprep.subr.bf16.mxu0 %v1695_v20  ;;  %v1743_v56 = vld [vmem:[%s2100_s3 + $0xc4] ss:$16 sps:$4 sm:$0xff]   ;;  %v1745_v57 = vld [vmem:[%s2100_s3 + $0xcc] ss:$16 sps:$4 sm:$0xff]   ;;  %v1747_v58 = vld [vmem:[%s2100_s3 + $0xc0] ss:$16 sps:$4 sm:$0xff]  }
  0x6b   : > { %1510 = vmatprep.subr.bf16.mxu1 %v1696_v21  ;;  %v1748_v59 = vld [vmem:[%s2100_s3 + $0xc8] ss:$16 sps:$4 sm:$0xff]   ;;  %v1749_v60 = vld [vmem:[%s2100_s3 + $0xe4] ss:$16 sps:$4 sm:$0xff]   ;;  %v1751_v61 = vld [vmem:[%s2100_s3 + $0xec] ss:$16 sps:$4 sm:$0xff]  }
  0x6c   : > { %v1753_v62 = vld [vmem:[%s2100_s3 + $0xe0] ss:$16 sps:$4 sm:$0xff]   ;;  %v1754_v63 = vld [vmem:[%s2100_s3 + $0xe8] ss:$16 sps:$4 sm:$0xff]   ;;  %v1755_v0 = vld [vmem:[%s2100_s3 + $0x104] ss:$16 sps:$4 sm:$0xff]  }
  0x6d   : > { %1399 = vmatpush3.bf16.msra.mxu0 %v1697_v22  ;;  %v1757_v1 = vld [vmem:[%s2100_s3 + $0x10c] ss:$16 sps:$4 sm:$0xff]   ;;  %v1759_v2 = vld [vmem:[%s2100_s3 + $0x100] ss:$16 sps:$4 sm:$0xff]   ;;  %v1760_v3 = vld [vmem:[%s2100_s3 + $0x108] ss:$16 sps:$4 sm:$0xff]  }
  0x6e   : > { %1511 = vmatpush3.bf16.msra.mxu1 %v1698_v23  ;;  %1400 = vmatprep.subr.bf16.mxu0 %v1699_v24  ;;  %v1761_v4 = vld [vmem:[%s2100_s3 + $0x124] ss:$16 sps:$4 sm:$0xff]   ;;  %v1763_v5 = vld [vmem:[%s2100_s3 + $0x12c] ss:$16 sps:$4 sm:$0xff]   ;;  %v1765_v6 = vld [vmem:[%s2100_s3 + $0x120] ss:$16 sps:$4 sm:$0xff]  }
  0x6f   : > { %1512 = vmatprep.subr.bf16.mxu1 %v1700_v25  ;;  %v1766_v7 = vld [vmem:[%s2100_s3 + $0x128] ss:$16 sps:$4 sm:$0xff]   ;;  %v1767_v8 = vld [vmem:[%s2100_s3 + $0x144] ss:$16 sps:$4 sm:$0xff]   ;;  %v1769_v9 = vld [vmem:[%s2100_s3 + $0x14c] ss:$16 sps:$4 sm:$0xff]  }
  0x70   : > { %v1771_v10 = vld [vmem:[%s2100_s3 + $0x140] ss:$16 sps:$4 sm:$0xff]   ;;  %v1772_v11 = vld [vmem:[%s2100_s3 + $0x148] ss:$16 sps:$4 sm:$0xff]   ;;  %v1773_v12 = vld [vmem:[%s2100_s3 + $0x164] ss:$16 sps:$4 sm:$0xff]  }
  0x71   : > { %1401 = vmatpush3.bf16.msra.mxu0 %v1701_v26  ;;  %v1775_v13 = vld [vmem:[%s2100_s3 + $0x16c] ss:$16 sps:$4 sm:$0xff]   ;;  %v1777_v14 = vld [vmem:[%s2100_s3 + $0x160] ss:$16 sps:$4 sm:$0xff]   ;;  %v1778_v15 = vld [vmem:[%s2100_s3 + $0x168] ss:$16 sps:$4 sm:$0xff]  }
  0x72   : > { %1513 = vmatpush3.bf16.msra.mxu1 %v1702_v27  ;;  %1402 = vmatprep.subr.bf16.mxu0 %v1703_v28  ;;  %v1779_v16 = vld [vmem:[%s2100_s3 + $0x184] ss:$16 sps:$4 sm:$0xff]   ;;  %v1781_v17 = vld [vmem:[%s2100_s3 + $0x18c] ss:$16 sps:$4 sm:$0xff]   ;;  %v1783_v18 = vld [vmem:[%s2100_s3 + $0x180] ss:$16 sps:$4 sm:$0xff]  }
  0x73   : > { %1514 = vmatprep.subr.bf16.mxu1 %v1704_v29  ;;  %v1784_v19 = vld [vmem:[%s2100_s3 + $0x188] ss:$16 sps:$4 sm:$0xff]   ;;  %v1785_v20 = vld [vmem:[%s2100_s3 + $0x1a4] ss:$16 sps:$4 sm:$0xff]   ;;  %v1787_v21 = vld [vmem:[%s2100_s3 + $0x1ac] ss:$16 sps:$4 sm:$0xff]  }
  0x74   : > { %v1789_v22 = vld [vmem:[%s2100_s3 + $0x1a0] ss:$16 sps:$4 sm:$0xff]   ;;  %v1790_v23 = vld [vmem:[%s2100_s3 + $0x1a8] ss:$16 sps:$4 sm:$0xff]   ;;  %v1791_v24 = vld [vmem:[%s2100_s3 + $0x1c4] ss:$16 sps:$4 sm:$0xff]  }
  0x75   : > { %1403 = vmatpush3.bf16.msra.mxu0 %v1705_v30  ;;  %v1793_v25 = vld [vmem:[%s2100_s3 + $0x1cc] ss:$16 sps:$4 sm:$0xff]   ;;  %v1795_v26 = vld [vmem:[%s2100_s3 + $0x1c0] ss:$16 sps:$4 sm:$0xff]   ;;  %v1796_v27 = vld [vmem:[%s2100_s3 + $0x1c8] ss:$16 sps:$4 sm:$0xff]  }
  0x76   : > { %1515 = vmatpush3.bf16.msra.mxu1 %v1706_v31  ;;  %v1797_v28 = vld [vmem:[%s2100_s3 + $0x1e4] ss:$16 sps:$4 sm:$0xff]   ;;  %v1799_v29 = vld [vmem:[%s2100_s3 + $0x1ec] ss:$16 sps:$4 sm:$0xff]   ;;  %v1801_v30 = vld [vmem:[%s2100_s3 + $0x1e0] ss:$16 sps:$4 sm:$0xff]  }
  0x77   : > { %v1802_v31 = vld [vmem:[%s2100_s3 + $0x1e8] ss:$16 sps:$4 sm:$0xff]  }
  0x78   : > { %854 = vmatmul.mubr.bf16.vlgmr.msra.gmra.mrb[0].mxu0 %v1707_v32 }
  0x79   : > { %1015 = vmatmul.mubr.bf16.vlgmr.msra.gmra.mrb[0].mxu1 %v1710_v34  ;;  %861 = vmatprep.mubr.bf16.mxu0 %v1713_v36 }
  0x7a   : > { %1022 = vmatprep.mubr.bf16.mxu1 %v1715_v37 }
  0x80   : > { %862 = vmatmul.mubr.bf16.gmra.mrb[4].mxu0 %v1717_v38 }
  0x81   : > { %1023 = vmatmul.mubr.bf16.gmra.mrb[4].mxu1 %v1718_v39  ;;  %869 = vmatprep.mubr.bf16.mxu0 %v1719_v40 }
  0x82   : > { %1030 = vmatprep.mubr.bf16.mxu1 %v1721_v41 }
  0x88   : > { %870 = vmatmul.mubr.bf16.gmra.mrb[8].mxu0 %v1723_v42 }
  0x89   : > { %1031 = vmatmul.mubr.bf16.gmra.mrb[8].mxu1 %v1724_v43  ;;  %877 = vmatprep.mubr.bf16.mxu0 %v1725_v44 }
  0x8a   : > { %1038 = vmatprep.mubr.bf16.mxu1 %v1727_v45 }
  0x90   : > { %878 = vmatmul.mubr.bf16.gmra.mrb[12].mxu0 %v1729_v46 }
  0x91   : > { %1039 = vmatmul.mubr.bf16.gmra.mrb[12].mxu1 %v1730_v47  ;;  %885 = vmatprep.mubr.bf16.mxu0 %v1731_v48 }
  0x92   : > { %1046 = vmatprep.mubr.bf16.mxu1 %v1733_v49 }
  0x98   : > { %886 = vmatmul.mubr.bf16.gmra.mrb[16].mxu0 %v1735_v50 }
  0x99   : > { %1047 = vmatmul.mubr.bf16.gmra.mrb[16].mxu1 %v1736_v51  ;;  %893 = vmatprep.mubr.bf16.mxu0 %v1737_v52 }
  0x9a   : > { %1054 = vmatprep.mubr.bf16.mxu1 %v1739_v53 }
  0xa0   : > { %894 = vmatmul.mubr.bf16.gmra.mrb[20].mxu0 %v1741_v54 }
  0xa1   : > { %1055 = vmatmul.mubr.bf16.gmra.mrb[20].mxu1 %v1742_v55  ;;  %901 = vmatprep.mubr.bf16.mxu0 %v1743_v56 }
  0xa2   : > { %1062 = vmatprep.mubr.bf16.mxu1 %v1745_v57 }
  0xa8   : > { %902 = vmatmul.mubr.bf16.gmra.mrb[24].mxu0 %v1747_v58 }
  0xa9   : > { %1063 = vmatmul.mubr.bf16.gmra.mrb[24].mxu1 %v1748_v59  ;;  %909 = vmatprep.mubr.bf16.mxu0 %v1749_v60 }
  0xaa   : > { %1070 = vmatprep.mubr.bf16.mxu1 %v1751_v61 }
  0xb0   : > { %910 = vmatmul.mubr.bf16.gmra.mrb[28].mxu0 %v1753_v62 }
  0xb1   : > { %1071 = vmatmul.mubr.bf16.gmra.mrb[28].mxu1 %v1754_v63  ;;  %917 = vmatprep.mubr.bf16.mxu0 %v1755_v0 }
  0xb2   : > { %1078 = vmatprep.mubr.bf16.mxu1 %v1757_v1 }
  0xb8   : > { %918 = vmatmul.mubr.bf16.gmra.mrb[32].mxu0 %v1759_v2 }
  0xb9   : > { %1079 = vmatmul.mubr.bf16.gmra.mrb[32].mxu1 %v1760_v3  ;;  %925 = vmatprep.mubr.bf16.mxu0 %v1761_v4 }
  0xba   : > { %1086 = vmatprep.mubr.bf16.mxu1 %v1763_v5 }
  0xc0   : > { %926 = vmatmul.mubr.bf16.gmra.mrb[36].mxu0 %v1765_v6 }
  0xc1   : > { %1087 = vmatmul.mubr.bf16.gmra.mrb[36].mxu1 %v1766_v7  ;;  %933 = vmatprep.mubr.bf16.mxu0 %v1767_v8 }
  0xc2   : > { %1094 = vmatprep.mubr.bf16.mxu1 %v1769_v9 }
  0xc8   : > { %934 = vmatmul.mubr.bf16.gmra.mrb[40].mxu0 %v1771_v10 }
  0xc9   : > { %1095 = vmatmul.mubr.bf16.gmra.mrb[40].mxu1 %v1772_v11  ;;  %941 = vmatprep.mubr.bf16.mxu0 %v1773_v12 }
  0xca   : > { %1102 = vmatprep.mubr.bf16.mxu1 %v1775_v13 }
  0xd0   : > { %942 = vmatmul.mubr.bf16.gmra.mrb[44].mxu0 %v1777_v14 }
  0xd1   : > { %1103 = vmatmul.mubr.bf16.gmra.mrb[44].mxu1 %v1778_v15  ;;  %949 = vmatprep.mubr.bf16.mxu0 %v1779_v16 }
  0xd2   : > { %1110 = vmatprep.mubr.bf16.mxu1 %v1781_v17 }
  0xd8   : > { %950 = vmatmul.mubr.bf16.gmra.mrb[48].mxu0 %v1783_v18 }
  0xd9   : > { %1111 = vmatmul.mubr.bf16.gmra.mrb[48].mxu1 %v1784_v19  ;;  %957 = vmatprep.mubr.bf16.mxu0 %v1785_v20 }
  0xda   : > { %1118 = vmatprep.mubr.bf16.mxu1 %v1787_v21 }
  0xe0   : > { %958 = vmatmul.mubr.bf16.gmra.mrb[52].mxu0 %v1789_v22 }
  0xe1   : > { %1119 = vmatmul.mubr.bf16.gmra.mrb[52].mxu1 %v1790_v23  ;;  %965 = vmatprep.mubr.bf16.mxu0 %v1791_v24 }
  0xe2   : > { %1126 = vmatprep.mubr.bf16.mxu1 %v1793_v25 }
  0xe8   : > { %966 = vmatmul.mubr.bf16.gmra.mrb[56].mxu0 %v1795_v26 }
  0xe9   : > { %1127 = vmatmul.mubr.bf16.gmra.mrb[56].mxu1 %v1796_v27  ;;  %973 = vmatprep.mubr.bf16.mxu0 %v1797_v28 }
  0xea   : > { %1134 = vmatprep.mubr.bf16.mxu1 %v1799_v29 }
  0xf0   : > { %974 = vmatmul.mubr.bf16.gmra.mrb[60].mxu0 %v1801_v30 }
  0xf1   : > { %1135 = vmatmul.mubr.bf16.gmra.mrb[60].mxu1 %v1802_v31 }
 0x14b   : > { %v1404_v32 = vpop.f32.mrb[0].mxu0 }
 0x14c   : > { %v1516_v33 = vpop.f32.mrb[0].mxu1  ;;  %v1405_v34 = vpop.f32.mrb[1].mxu0 }
 0x14d   : > { %v1406_v35 = vadd.f32 %v1405_v34, %v1404_v32  ;;  %v1517_v36 = vpop.f32.mrb[1].mxu1  ;;  %v1407_v37 = vpop.f32.mrb[2].mxu0 }
 0x14e   : > { %v1518_v38 = vadd.f32 %v1517_v36, %v1516_v33  ;;  %v1519_v39 = vpop.f32.mrb[2].mxu1  ;;  %v1408_v40 = vpop.f32.mrb[3].mxu0 }
 0x14f   : > { %v1409_v41 = vadd.f32 %v1408_v40, %v1407_v37  ;;  %v1520_v42 = vpop.f32.mrb[3].mxu1 }
 0x150   : > { %v1017_v43 = vadd.f32 %v1518_v38, %v1406_v35  ;;  %v1521_v44 = vadd.f32 %v1520_v42, %v1519_v39 }
 0x152   : > { %1143 = vst [vmem:[%s2175_s17] sm:$0xff] %v1017_v43  ;;  %v1020_v45 = vadd.f32 %v1521_v44, %v1409_v41 }
 0x153   : > { %v1410_v46 = vpop.f32.mrb[4].mxu0 }
 0x154   : > { %1144 = vst [vmem:[%s2175_s17 + $0x8] sm:$0xff] %v1020_v45  ;;  %v1522_v47 = vpop.f32.mrb[4].mxu1  ;;  %v1411_v48 = vpop.f32.mrb[5].mxu0 }
 0x155   : > { %v1412_v49 = vadd.f32 %v1411_v48, %v1410_v46  ;;  %v1523_v50 = vpop.f32.mrb[5].mxu1  ;;  %v1413_v51 = vpop.f32.mrb[6].mxu0 }
 0x156   : > { %v1524_v52 = vadd.f32 %v1523_v50, %v1522_v47  ;;  %v1525_v53 = vpop.f32.mrb[6].mxu1  ;;  %v1414_v54 = vpop.f32.mrb[7].mxu0 }
 0x157   : > { %v1415_v55 = vadd.f32 %v1414_v54, %v1413_v51  ;;  %v1526_v56 = vpop.f32.mrb[7].mxu1 }
 0x158   : > { %v1025_v57 = vadd.f32 %v1524_v52, %v1412_v49  ;;  %v1527_v58 = vadd.f32 %v1526_v56, %v1525_v53 }
 0x15a   : > { %1145 = vst [vmem:[%s2175_s17 + $0x10] sm:$0xff] %v1025_v57  ;;  %v1028_v59 = vadd.f32 %v1527_v58, %v1415_v55 }
 0x15b   : > { %v1416_v60 = vpop.f32.mrb[8].mxu0 }
 0x15c   : > { %1146 = vst [vmem:[%s2175_s17 + $0x18] sm:$0xff] %v1028_v59  ;;  %v1528_v61 = vpop.f32.mrb[8].mxu1  ;;  %v1417_v62 = vpop.f32.mrb[9].mxu0 }
 0x15d   : > { %v1418_v63 = vadd.f32 %v1417_v62, %v1416_v60  ;;  %v1529_v0 = vpop.f32.mrb[9].mxu1  ;;  %v1419_v1 = vpop.f32.mrb[10].mxu0 }
 0x15e   : > { %v1530_v2 = vadd.f32 %v1529_v0, %v1528_v61  ;;  %v1531_v3 = vpop.f32.mrb[10].mxu1  ;;  %v1420_v4 = vpop.f32.mrb[11].mxu0 }
 0x15f   : > { %v1421_v5 = vadd.f32 %v1420_v4, %v1419_v1  ;;  %v1532_v6 = vpop.f32.mrb[11].mxu1 }
 0x160   : > { %v1033_v7 = vadd.f32 %v1530_v2, %v1418_v63  ;;  %v1533_v8 = vadd.f32 %v1532_v6, %v1531_v3 }
 0x162   : > { %1147 = vst [vmem:[%s2175_s17 + $0x20] sm:$0xff] %v1033_v7  ;;  %v1036_v9 = vadd.f32 %v1533_v8, %v1421_v5 }
 0x163   : > { %v1422_v10 = vpop.f32.mrb[12].mxu0 }
 0x164   : > { %1148 = vst [vmem:[%s2175_s17 + $0x28] sm:$0xff] %v1036_v9  ;;  %v1534_v11 = vpop.f32.mrb[12].mxu1  ;;  %v1423_v12 = vpop.f32.mrb[13].mxu0 }
 0x165   : > { %v1424_v13 = vadd.f32 %v1423_v12, %v1422_v10  ;;  %v1535_v14 = vpop.f32.mrb[13].mxu1  ;;  %v1425_v15 = vpop.f32.mrb[14].mxu0 }
 0x166   : > { %v1536_v16 = vadd.f32 %v1535_v14, %v1534_v11  ;;  %v1537_v17 = vpop.f32.mrb[14].mxu1  ;;  %v1426_v18 = vpop.f32.mrb[15].mxu0 }
 0x167   : > { %v1427_v19 = vadd.f32 %v1426_v18, %v1425_v15  ;;  %v1538_v20 = vpop.f32.mrb[15].mxu1 }
 0x168   : > { %v1041_v21 = vadd.f32 %v1536_v16, %v1424_v13  ;;  %v1539_v22 = vadd.f32 %v1538_v20, %v1537_v17 }
 0x16a   : > { %1149 = vst [vmem:[%s2175_s17 + $0x30] sm:$0xff] %v1041_v21  ;;  %v1044_v23 = vadd.f32 %v1539_v22, %v1427_v19 }
 0x16b   : > { %v1428_v24 = vpop.f32.mrb[16].mxu0 }
 0x16c   : > { %1150 = vst [vmem:[%s2175_s17 + $0x38] sm:$0xff] %v1044_v23  ;;  %v1540_v25 = vpop.f32.mrb[16].mxu1  ;;  %v1429_v26 = vpop.f32.mrb[17].mxu0 }
 0x16d   : > { %v1430_v27 = vadd.f32 %v1429_v26, %v1428_v24  ;;  %v1541_v28 = vpop.f32.mrb[17].mxu1  ;;  %v1431_v29 = vpop.f32.mrb[18].mxu0 }
 0x16e   : > { %v1542_v30 = vadd.f32 %v1541_v28, %v1540_v25  ;;  %v1543_v31 = vpop.f32.mrb[18].mxu1  ;;  %v1432_v32 = vpop.f32.mrb[19].mxu0 }
 0x16f   : > { %v1433_v33 = vadd.f32 %v1432_v32, %v1431_v29  ;;  %v1544_v34 = vpop.f32.mrb[19].mxu1 }
 0x170   : > { %v1049_v35 = vadd.f32 %v1542_v30, %v1430_v27  ;;  %v1545_v36 = vadd.f32 %v1544_v34, %v1543_v31 }
 0x172   : > { %1151 = vst [vmem:[%s2175_s17 + $0x40] sm:$0xff] %v1049_v35  ;;  %v1052_v37 = vadd.f32 %v1545_v36, %v1433_v33 }
 0x173   : > { %v1434_v38 = vpop.f32.mrb[20].mxu0 }
 0x174   : > { %1152 = vst [vmem:[%s2175_s17 + $0x48] sm:$0xff] %v1052_v37  ;;  %v1546_v39 = vpop.f32.mrb[20].mxu1  ;;  %v1435_v40 = vpop.f32.mrb[21].mxu0 }
 0x175   : > { %v1436_v41 = vadd.f32 %v1435_v40, %v1434_v38  ;;  %v1547_v42 = vpop.f32.mrb[21].mxu1  ;;  %v1437_v43 = vpop.f32.mrb[22].mxu0 }
 0x176   : > { %v1548_v44 = vadd.f32 %v1547_v42, %v1546_v39  ;;  %v1549_v45 = vpop.f32.mrb[22].mxu1  ;;  %v1438_v46 = vpop.f32.mrb[23].mxu0 }
 0x177   : > { %v1439_v47 = vadd.f32 %v1438_v46, %v1437_v43  ;;  %v1550_v48 = vpop.f32.mrb[23].mxu1 }
 0x178   : > { %v1057_v49 = vadd.f32 %v1548_v44, %v1436_v41  ;;  %v1551_v50 = vadd.f32 %v1550_v48, %v1549_v45 }
 0x17a   : > { %1153 = vst [vmem:[%s2175_s17 + $0x50] sm:$0xff] %v1057_v49  ;;  %v1060_v51 = vadd.f32 %v1551_v50, %v1439_v47 }
 0x17b   : > { %v1440_v52 = vpop.f32.mrb[24].mxu0 }
 0x17c   : > { %1154 = vst [vmem:[%s2175_s17 + $0x58] sm:$0xff] %v1060_v51  ;;  %v1552_v53 = vpop.f32.mrb[24].mxu1  ;;  %v1441_v54 = vpop.f32.mrb[25].mxu0 }
 0x17d   : > { %v1442_v55 = vadd.f32 %v1441_v54, %v1440_v52  ;;  %v1553_v56 = vpop.f32.mrb[25].mxu1  ;;  %v1443_v57 = vpop.f32.mrb[26].mxu0 }
 0x17e   : > { %v1554_v58 = vadd.f32 %v1553_v56, %v1552_v53  ;;  %v1555_v59 = vpop.f32.mrb[26].mxu1  ;;  %v1444_v60 = vpop.f32.mrb[27].mxu0 }
 0x17f   : > { %v1445_v61 = vadd.f32 %v1444_v60, %v1443_v57  ;;  %v1556_v62 = vpop.f32.mrb[27].mxu1 }
 0x180   : > { %v1065_v63 = vadd.f32 %v1554_v58, %v1442_v55  ;;  %v1557_v0 = vadd.f32 %v1556_v62, %v1555_v59 }
 0x182   : > { %1155 = vst [vmem:[%s2175_s17 + $0x60] sm:$0xff] %v1065_v63  ;;  %v1068_v1 = vadd.f32 %v1557_v0, %v1445_v61 }
 0x183   : > { %v1446_v2 = vpop.f32.mrb[28].mxu0 }
 0x184   : > { %1156 = vst [vmem:[%s2175_s17 + $0x68] sm:$0xff] %v1068_v1  ;;  %v1558_v3 = vpop.f32.mrb[28].mxu1  ;;  %v1447_v4 = vpop.f32.mrb[29].mxu0 }
 0x185   : > { %v1448_v5 = vadd.f32 %v1447_v4, %v1446_v2  ;;  %v1559_v6 = vpop.f32.mrb[29].mxu1  ;;  %v1449_v7 = vpop.f32.mrb[30].mxu0 }
 0x186   : > { %v1560_v8 = vadd.f32 %v1559_v6, %v1558_v3  ;;  %v1561_v9 = vpop.f32.mrb[30].mxu1  ;;  %v1450_v10 = vpop.f32.mrb[31].mxu0 }
 0x187   : > { %v1451_v11 = vadd.f32 %v1450_v10, %v1449_v7  ;;  %v1562_v12 = vpop.f32.mrb[31].mxu1 }
 0x188   : > { %v1073_v13 = vadd.f32 %v1560_v8, %v1448_v5  ;;  %v1563_v14 = vadd.f32 %v1562_v12, %v1561_v9 }
 0x18a   : > { %1157 = vst [vmem:[%s2175_s17 + $0x70] sm:$0xff] %v1073_v13  ;;  %v1076_v15 = vadd.f32 %v1563_v14, %v1451_v11 }
 0x18b   : > { %v1452_v16 = vpop.f32.mrb[32].mxu0 }
 0x18c   : > { %1158 = vst [vmem:[%s2175_s17 + $0x78] sm:$0xff] %v1076_v15  ;;  %v1564_v17 = vpop.f32.mrb[32].mxu1  ;;  %v1453_v18 = vpop.f32.mrb[33].mxu0 }
 0x18d   : > { %v1454_v19 = vadd.f32 %v1453_v18, %v1452_v16  ;;  %v1565_v20 = vpop.f32.mrb[33].mxu1  ;;  %v1455_v21 = vpop.f32.mrb[34].mxu0 }
 0x18e   : > { %v1566_v22 = vadd.f32 %v1565_v20, %v1564_v17  ;;  %v1567_v23 = vpop.f32.mrb[34].mxu1  ;;  %v1456_v24 = vpop.f32.mrb[35].mxu0 }
 0x18f   : > { %v1457_v25 = vadd.f32 %v1456_v24, %v1455_v21  ;;  %v1568_v26 = vpop.f32.mrb[35].mxu1 }
 0x190   : > { %v1081_v27 = vadd.f32 %v1566_v22, %v1454_v19  ;;  %v1569_v28 = vadd.f32 %v1568_v26, %v1567_v23 }
 0x192   : > { %1159 = vst [vmem:[%s2175_s17 + $0x80] sm:$0xff] %v1081_v27  ;;  %v1084_v29 = vadd.f32 %v1569_v28, %v1457_v25 }
 0x193   : > { %v1458_v30 = vpop.f32.mrb[36].mxu0 }
 0x194   : > { %1160 = vst [vmem:[%s2175_s17 + $0x88] sm:$0xff] %v1084_v29  ;;  %v1570_v31 = vpop.f32.mrb[36].mxu1  ;;  %v1459_v32 = vpop.f32.mrb[37].mxu0 }
 0x195   : > { %v1460_v33 = vadd.f32 %v1459_v32, %v1458_v30  ;;  %v1571_v34 = vpop.f32.mrb[37].mxu1  ;;  %v1461_v35 = vpop.f32.mrb[38].mxu0 }
 0x196   : > { %v1572_v36 = vadd.f32 %v1571_v34, %v1570_v31  ;;  %v1573_v37 = vpop.f32.mrb[38].mxu1  ;;  %v1462_v38 = vpop.f32.mrb[39].mxu0 }
 0x197   : > { %v1463_v39 = vadd.f32 %v1462_v38, %v1461_v35  ;;  %v1574_v40 = vpop.f32.mrb[39].mxu1 }
 0x198   : > { %v1089_v41 = vadd.f32 %v1572_v36, %v1460_v33  ;;  %v1575_v42 = vadd.f32 %v1574_v40, %v1573_v37 }
 0x19a   : > { %1161 = vst [vmem:[%s2175_s17 + $0x90] sm:$0xff] %v1089_v41  ;;  %v1092_v43 = vadd.f32 %v1575_v42, %v1463_v39 }
 0x19b   : > { %v1464_v44 = vpop.f32.mrb[40].mxu0 }
 0x19c   : > { %1162 = vst [vmem:[%s2175_s17 + $0x98] sm:$0xff] %v1092_v43  ;;  %v1576_v45 = vpop.f32.mrb[40].mxu1  ;;  %v1465_v46 = vpop.f32.mrb[41].mxu0 }
 0x19d   : > { %v1466_v47 = vadd.f32 %v1465_v46, %v1464_v44  ;;  %v1577_v48 = vpop.f32.mrb[41].mxu1  ;;  %v1467_v49 = vpop.f32.mrb[42].mxu0 }
 0x19e   : > { %v1578_v50 = vadd.f32 %v1577_v48, %v1576_v45  ;;  %v1579_v51 = vpop.f32.mrb[42].mxu1  ;;  %v1468_v52 = vpop.f32.mrb[43].mxu0 }
 0x19f   : > { %v1469_v53 = vadd.f32 %v1468_v52, %v1467_v49  ;;  %v1580_v54 = vpop.f32.mrb[43].mxu1 }
 0x1a0   : > { %v1097_v55 = vadd.f32 %v1578_v50, %v1466_v47  ;;  %v1581_v56 = vadd.f32 %v1580_v54, %v1579_v51 }
 0x1a2   : > { %1163 = vst [vmem:[%s2175_s17 + $0xa0] sm:$0xff] %v1097_v55  ;;  %v1100_v57 = vadd.f32 %v1581_v56, %v1469_v53 }
 0x1a3   : > { %v1470_v58 = vpop.f32.mrb[44].mxu0 }
 0x1a4   : > { %1164 = vst [vmem:[%s2175_s17 + $0xa8] sm:$0xff] %v1100_v57  ;;  %v1582_v59 = vpop.f32.mrb[44].mxu1  ;;  %v1471_v60 = vpop.f32.mrb[45].mxu0 }
 0x1a5   : > { %v1472_v61 = vadd.f32 %v1471_v60, %v1470_v58  ;;  %v1583_v62 = vpop.f32.mrb[45].mxu1  ;;  %v1473_v63 = vpop.f32.mrb[46].mxu0 }
 0x1a6   : > { %v1584_v0 = vadd.f32 %v1583_v62, %v1582_v59  ;;  %v1585_v1 = vpop.f32.mrb[46].mxu1  ;;  %v1474_v2 = vpop.f32.mrb[47].mxu0 }
 0x1a7   : > { %v1475_v3 = vadd.f32 %v1474_v2, %v1473_v63  ;;  %v1586_v4 = vpop.f32.mrb[47].mxu1 }
 0x1a8   : > { %v1105_v5 = vadd.f32 %v1584_v0, %v1472_v61  ;;  %v1587_v6 = vadd.f32 %v1586_v4, %v1585_v1 }
 0x1aa   : > { %1165 = vst [vmem:[%s2175_s17 + $0xb0] sm:$0xff] %v1105_v5  ;;  %v1108_v7 = vadd.f32 %v1587_v6, %v1475_v3 }
 0x1ab   : > { %v1476_v8 = vpop.f32.mrb[48].mxu0 }
 0x1ac   : > { %1166 = vst [vmem:[%s2175_s17 + $0xb8] sm:$0xff] %v1108_v7  ;;  %v1588_v9 = vpop.f32.mrb[48].mxu1  ;;  %v1477_v10 = vpop.f32.mrb[49].mxu0 }
 0x1ad   : > { %v1478_v11 = vadd.f32 %v1477_v10, %v1476_v8  ;;  %v1589_v12 = vpop.f32.mrb[49].mxu1  ;;  %v1479_v13 = vpop.f32.mrb[50].mxu0 }
 0x1ae   : > { %v1590_v14 = vadd.f32 %v1589_v12, %v1588_v9  ;;  %v1591_v15 = vpop.f32.mrb[50].mxu1  ;;  %v1480_v16 = vpop.f32.mrb[51].mxu0 }
 0x1af   : > { %v1481_v17 = vadd.f32 %v1480_v16, %v1479_v13  ;;  %v1592_v18 = vpop.f32.mrb[51].mxu1 }
 0x1b0   : > { %v1113_v19 = vadd.f32 %v1590_v14, %v1478_v11  ;;  %v1593_v20 = vadd.f32 %v1592_v18, %v1591_v15 }
 0x1b2   : > { %1167 = vst [vmem:[%s2175_s17 + $0xc0] sm:$0xff] %v1113_v19  ;;  %v1116_v21 = vadd.f32 %v1593_v20, %v1481_v17 }
 0x1b3   : > { %v1482_v22 = vpop.f32.mrb[52].mxu0 }
 0x1b4   : > { %1168 = vst [vmem:[%s2175_s17 + $0xc8] sm:$0xff] %v1116_v21  ;;  %v1594_v23 = vpop.f32.mrb[52].mxu1  ;;  %v1483_v24 = vpop.f32.mrb[53].mxu0 }
 0x1b5   : > { %v1484_v25 = vadd.f32 %v1483_v24, %v1482_v22  ;;  %v1595_v26 = vpop.f32.mrb[53].mxu1  ;;  %v1485_v27 = vpop.f32.mrb[54].mxu0 }
 0x1b6   : > { %v1596_v28 = vadd.f32 %v1595_v26, %v1594_v23  ;;  %v1597_v29 = vpop.f32.mrb[54].mxu1  ;;  %v1486_v30 = vpop.f32.mrb[55].mxu0 }
 0x1b7   : > { %v1487_v31 = vadd.f32 %v1486_v30, %v1485_v27  ;;  %v1598_v32 = vpop.f32.mrb[55].mxu1 }
 0x1b8   : > { %v1121_v33 = vadd.f32 %v1596_v28, %v1484_v25  ;;  %v1599_v34 = vadd.f32 %v1598_v32, %v1597_v29 }
 0x1ba   : > { %1169 = vst [vmem:[%s2175_s17 + $0xd0] sm:$0xff] %v1121_v33  ;;  %v1124_v35 = vadd.f32 %v1599_v34, %v1487_v31 }
 0x1bb   : > { %v1488_v36 = vpop.f32.mrb[56].mxu0 }
 0x1bc   : > { %1170 = vst [vmem:[%s2175_s17 + $0xd8] sm:$0xff] %v1124_v35  ;;  %v1600_v37 = vpop.f32.mrb[56].mxu1  ;;  %v1489_v38 = vpop.f32.mrb[57].mxu0 }
 0x1bd   : > { %v1490_v39 = vadd.f32 %v1489_v38, %v1488_v36  ;;  %v1601_v40 = vpop.f32.mrb[57].mxu1  ;;  %v1491_v41 = vpop.f32.mrb[58].mxu0 }
 0x1be   : > { %v1602_v42 = vadd.f32 %v1601_v40, %v1600_v37  ;;  %v1603_v43 = vpop.f32.mrb[58].mxu1  ;;  %v1492_v44 = vpop.f32.mrb[59].mxu0 }
 0x1bf   : > { %v1493_v45 = vadd.f32 %v1492_v44, %v1491_v41  ;;  %v1604_v46 = vpop.f32.mrb[59].mxu1 }
 0x1c0   : > { %v1129_v47 = vadd.f32 %v1602_v42, %v1490_v39  ;;  %v1605_v48 = vadd.f32 %v1604_v46, %v1603_v43 }
 0x1c2   : > { %1171 = vst [vmem:[%s2175_s17 + $0xe0] sm:$0xff] %v1129_v47  ;;  %v1132_v49 = vadd.f32 %v1605_v48, %v1493_v45 }
 0x1c3   : > { %v1494_v50 = vpop.f32.mrb[60].mxu0 }
 0x1c4   : > { %1172 = vst [vmem:[%s2175_s17 + $0xe8] sm:$0xff] %v1132_v49  ;;  %v1606_v51 = vpop.f32.mrb[60].mxu1  ;;  %v1495_v52 = vpop.f32.mrb[61].mxu0 }
 0x1c5   : > { %v1496_v53 = vadd.f32 %v1495_v52, %v1494_v50  ;;  %v1607_v54 = vpop.f32.mrb[61].mxu1  ;;  %v1497_v55 = vpop.f32.mrb[62].mxu0 }
 0x1c6   : > { %v1608_v56 = vadd.f32 %v1607_v54, %v1606_v51  ;;  %v1609_v57 = vpop.f32.mrb[62].mxu1  ;;  %v1498_v58 = vpop.f32.mrb[63].mxu0 }
 0x1c7   : > { %v1499_v59 = vadd.f32 %v1498_v58, %v1497_v55  ;;  %v1610_v60 = vpop.f32.mrb[63].mxu1 }
 0x1c8   : > { %v1137_v61 = vadd.f32 %v1608_v56, %v1496_v53  ;;  %v1611_v62 = vadd.f32 %v1610_v60, %v1609_v57 }
 0x1ca   : > { %1173 = vst [vmem:[%s2175_s17 + $0xf0] sm:$0xff] %v1137_v61  ;;  %v1140_v63 = vadd.f32 %v1611_v62, %v1499_v59 }
 0x1cc   : > { %1174 = vst [vmem:[%s2175_s17 + $0xf8] sm:$0xff] %v1140_v63 }
 0x1cd   : > { %1874 = shalt.err (!%p1871_p7)
}
 0x1ce   : > { %s1875_s24 = scalar_lea.hbm %s2212_s4, 4096  ;;  %s1879_s26 = scalar_lea.hbm %s2262_s2, 8192 }
 0x1cf   : > { %p1876_p9 = scmp.ne.s32.totalorder %s2212_s4, %s1875_s24  ;;  %p1880_p5 = scmp.lt.u32.totalorder %s2212_s4, %s2262_s2 }
 0x1d0   : > { %p1881_p11 = scmp.lt.u32.totalorder %s1879_s26, %s1875_s24  ;;  %p1883_p4 = scmp.lt.u32.totalorder %s1875_s24, %s2212_s4 }
 0x1d1   : > { %p1877_p2 = pnand %p1876_p9, %p2048_p12 }
 0x1d2   : > { %p1882_p1 = por %p1881_p11, %p1880_p5 }
 0x1d3   : > { %p1878_p0 = pneg %p1877_p2 }
 0x1d4   : > { %p1884_p6 = por %p1883_p4, %p1882_p1 }
 0x1d6   : > { %p1885_p8 = pnand %p1884_p6, %p1878_p0 }
 0x1d8   : > { %1888 = shalt.err (!%p1885_p8)
}
 0x1d9   : > { %s1940_s3 = smov 128   ;;  %s1941_s15 = smov 8  }
 0x1da   : > { %1618 = dma.vmem_to_hbm [thread:$0]  (%p2048_p12), %s2214_s22, 4096, %s2212_s4, %s1176_s5, %s1940_s3, %s1940_s3, %s1941_s15  }
 0x1db PF: > { %s1204_s17 = sand.u32 1, %s1919_s9   ;;  %p2277_p10 = scmp.ne.s32.totalorder %s2267_s16, 0 }
 0x1dc   : > { %p2278_p13 = scmp.ge.s32.totalorder %s1931_s12, 2  ;;  %s1205_s27 = scalar_lea.sflag [#allocation4], %s1204_s17 }
 0x1de   : > { %p1629_p3 = pnand %p2278_p13, %p2277_p10 }
 0x1e0   : > { %1914 = dma.done.wait (!%p1629_p3), %s1205_s27, 4096  }
 0x1e1   : > { %1916 = vsyncadd (!%p1629_p3), %s1205_s27, 4294963200  ;;  %p16_p7 = scmp.ge.s32.totalorder %s2013_s21, 4   ;;  %s2279_s9 = smov %s1923_s10 }
 0x1e2   : > { %s2280_s10 = smov %s1927_s11  ;;  %s2281_s11 = smov %s2044_s8 }
 0x1e3   : > { %s2282_s12 = smov %s2013_s21  ;;  %18 = sbr.rel (!%p16_p7) target bundleno = 6 (0x6), region = 77 }
 0x1ea   :  { %1210 = vsyncpa [#allocation3], 1 }
 0x1eb   :  { %1212 = vsyncpa [#allocation3 + $0x1], 1 }
 0x1ec   :  { %1213 = vsyncpa [#allocation6], 1 }
 0x1ed   :  { %1214 = vsyncpa [#allocation4], 1 }
 0x1ee   :  { %1216 = vsyncpa [#allocation4 + $0x1], 1 }

// kernel: tpu_custom_call.1
= control target key start
LH: loop header
LB: loop body
LE: loop exit
PB: predicated region body
PF: predicated region fallthrough
CT: control target
= control target key end

     0   :  { %7 = vsyncpa [#allocation3], 0  ;;  %s2260_s0 = inlined_call_operand.hbm [shape: bf16[512,512], index: 0, kind: input, shape index: {}]   ;;  %s2261_s1 = inlined_call_operand.hbm [shape: bf16[512,128], index: 1, kind: input, shape index: {}]   ;;  %s2262_s2 = inlined_call_operand.hbm [shape: f32[512,128], index: 2, kind: output, shape index: {}]  }
   0x1   :  { %9 = vsyncpa [#allocation3 + $0x1], 0 }
   0x2   :  { %10 = vsyncpa [#allocation6], 0 }
   0x3   :  { %11 = vsyncpa [#allocation4], 0 }
   0x4   :  { %13 = vsyncpa [#allocation4 + $0x1], 0  ;;  %s1957_s9 = smov 0   ;;  %s1959_s10 = smov 0  }
   0x5   :  { %s1961_s11 = smov 0   ;;  %s1963_s12 = smov 0  }
   0x6 LB: > { %s1978_s13 = sadd.s32 4294967295, %s1931_s12   ;;  %s1272_s14 = sadd.s32 4294967294, %s1931_s12   ;;  %s1931_s12 = sphi %s1963_s12, %s2282_s12   ;;  %s1927_s11 = sphi %s1961_s11, %s2281_s11   ;;  %s1923_s10 = sphi %s1959_s10, %s2280_s10   ;;  %s1919_s9 = sphi %s1957_s9, %s2279_s9  }
   0x7   : > { %p39_p0 = scmp.ne.s32.totalorder %s1923_s10, %s1919_s9  ;;  %p2263_p1 = scmp.eq.s32.totalorder %s1978_s13, 0 }
   0x8   : > { %p90_p3 = scmp.eq.s32.totalorder %s1272_s14, 1  ;;  %p1273_p5 = scmp.ge.s32.totalorder %s1931_s12, 1 }
   0x9   : > { %p1987_p4 = por %p2263_p1, %p39_p0  ;;  %p97_p7 = scmp.lt.s32.totalorder %s1931_s12, 3 }
   0xa   : > { %p1992_p6 = por %p90_p3, %p39_p0  ;;  %s1933_s18 = smov [#allocation5]  }
   0xb   : > { %s2266_s15 = scalar_select %p1987_p4, 1, 0 }
   0xc   : > { %s2267_s16 = scalar_select %p1992_p6, 1, 0 }
   0xd   : > { %p1997_p8 = pnand %p1273_p5, %p97_p7  ;;  %s109_s19 = sshll.u32 %s1933_s18, 4  ;;  %s2001_s19 = int_to_ptr.vmem [resolvable:$true] %s109_s19 }
   0xe   : > { %s2013_s21 = sadd.s32 1, %s1931_s12   ;;  %s26_s22 = sadd.s32 1, %s1927_s11 }
   0xf   : > { %s2268_s17 = scalar_select %p1997_p8, 1, 0 }
  0x10   : > { %p1620_p9 = pneg %p1997_p8  ;;  %s23_s23 = ssub.s32 %s1931_s12, %s2013_s21 }
  0x11   : > { %s1803_s26 = scalar_lea.hbm %s2261_s1, 4096 }
  0x12   : > { %p2008_p11 = pnand %p1620_p9, %p2263_p1  ;;  %p1804_p12 = scmp.ne.s32.totalorder %s2261_s1, %s1803_s26 }
  0x13   : > { %p1810_p5 = scmp.lt.u32.totalorder %s1803_s26, %s2261_s1 }
  0x14   : > { %p1805_p13 = pneg %p2008_p11 }
  0x16   : > { %p1806_p0 = pnand %p1805_p13, %p1804_p12 }
  0x18   : > { %p1807_p3 = pneg %p1806_p0 }
  0x1a   : > { %p1812_p7 = pnand %p1810_p5, %p1807_p3 }
  0x1c   : > { %1815 = shalt.err (!%p1812_p7)
}
  0x1d   : > { %s1816_s3 = scalar_lea.vmem %s2001_s19, 4096  ;;  %p1824_p2 = scmp.lt.s32.totalorder %s2001_s19, %s2001_s19 }
  0x1e   : > { %p1817_p9 = scmp.ne.s32.totalorder %s2001_s19, %s1816_s3  ;;  %p1825_p6 = scmp.lt.s32.totalorder %s1816_s3, %s1816_s3 }
  0x20   : > { %p1819_p10 = pnand %p1817_p9, %p1805_p13  ;;  %p1826_p4 = por %p1825_p6, %p1824_p2 }
  0x22   : > { %p1820_p1 = pneg %p1819_p10 }
  0x24   : > { %p1827_p8 = pnand %p1826_p4, %p1820_p1 }
  0x26   : > { %1830 = shalt.err (!%p1827_p8)
}
  0x27   : > { %s1934_s4 = smov 64   ;;  %s1935_s5 = smov 4  }
  0x28   : > { %1623 = dma.hbm_to_vmem [thread:$0]  (!%p2008_p11), %s2261_s1, 4096, %s2001_s19, [#allocation6], %s1934_s4, %s1934_s4, %s1935_s5  }
  0x29   : > { %p24_p2 = scmp.eq.s32.totalorder %s23_s23, 0  ;;  %p33_p1 = scmp.ne.s32.totalorder %s1927_s11, %s1923_s10 }
  0x2a   : > { %p34_p4 = scmp.eq.s32.totalorder %s1931_s12, 0  ;;  %p1633_p6 = scmp.lt.s32.totalorder %s1931_s12, 2 }
  0x2b   : > { %s2044_s8 = scalar_select %p24_p2, %s1927_s11, %s26_s22  }
  0x2c   : > { %p35_p8 = por %p34_p4, %p33_p1  ;;  %p2270_p10 = scmp.eq.s32.totalorder %s1978_s13, 1 }
  0x2d   : > { %s123_s18 = sand.u32 1, %s1927_s11   ;;  %s1386_s24 = sshll.u32 %s1931_s12, 13 }
  0x2e   : > { %p2048_p12 = por %p2270_p10, %p33_p1  ;;  %s1276_s25 = sshll.u32 %s123_s18, 9 }
  0x2f   : > { %s2057_s27 = scalar_lea.hbm %s2260_s0, %s1386_s24  ;;  %s127_s19 = scalar_lea.vmem [#allocation2], %s1276_s25 }
  0x30   : > { %s135_s22 = sshll.u32 %s127_s19, 4  ;;  %p2059_p11 = pnand %p1633_p6, %p35_p8  ;;  %s2063_s22 = int_to_ptr.vmem [resolvable:$true] %s135_s22 }
  0x31   : > { %s2065_s28 = scalar_lea.sflag [#allocation3], %s123_s18  ;;  %s1831_s29 = scalar_lea.hbm %s2057_s27, 8192 }
  0x32   : > { %p1832_p13 = scmp.ne.s32.totalorder %s2057_s27, %s1831_s29  ;;  %p1833_p0 = pneg %p2059_p11 }
  0x33   : > { %s1836_s4 = scalar_lea.hbm %s2260_s0, 16384  ;;  %p1837_p7 = scmp.lt.u32.totalorder %s2057_s27, %s2260_s0 }
  0x34   : > { %p1834_p3 = pnand %p1833_p0, %p1832_p13  ;;  %p1838_p9 = scmp.lt.u32.totalorder %s1836_s4, %s1831_s29 }
  0x35   : > { %p1840_p1 = scmp.lt.u32.totalorder %s1831_s29, %s2057_s27 }
  0x36   : > { %p1835_p5 = pneg %p1834_p3  ;;  %p1839_p2 = por %p1838_p9, %p1837_p7 }
  0x38   : > { %p1841_p4 = por %p1840_p1, %p1839_p2 }
  0x3a   : > { %p1842_p6 = pnand %p1841_p4, %p1835_p5 }
  0x3c   : > { %1845 = shalt.err (!%p1842_p6)
}
  0x3d   : > { %s1846_s7 = scalar_lea.vmem %s2063_s22, 8192  ;;  %s1936_s18 = smov [#allocation2]  }
  0x3e   : > { %p1847_p8 = scmp.ne.s32.totalorder %s2063_s22, %s1846_s7  ;;  %s1851_s24 = sshll.u32 %s1936_s18, 4  ;;  %s1852_s24 = int_to_ptr.vmem [resolvable:$false] %s1851_s24 }
  0x3f   : > { %s1853_s25 = scalar_lea.vmem %s1852_s24, 16384  ;;  %p1854_p3 = scmp.lt.s32.totalorder %s2063_s22, %s1852_s24 }
  0x40   : > { %p1849_p10 = pnand %p1847_p8, %p1833_p0  ;;  %p1855_p7 = scmp.lt.s32.totalorder %s1853_s25, %s1846_s7 }
  0x42   : > { %p1850_p13 = pneg %p1849_p10  ;;  %p1856_p9 = por %p1855_p7, %p1854_p3 }
  0x44   : > { %p1857_p2 = pnand %p1856_p9, %p1850_p13 }
  0x46   : > { %1860 = shalt.err (!%p1857_p2)
}
  0x47   : > { %s1937_s20 = smov 256   ;;  %s1938_s26 = smov 16  }
  0x48   : > { %1627 = dma.hbm_to_vmem [thread:$0]  (!%p2059_p11), %s2057_s27, 8192, %s2063_s22, %s2065_s28, %s1937_s20, %s1937_s20, %s1938_s26  }
  0x49   : > { %p2273_p0 = scmp.ne.s32.totalorder %s2268_s17, 0 }
  0x4a   : > { %s2096_s19 = sand.u32 (!%p2273_p0), 1, %s1923_s10   ;;  %p2274_p5 = scmp.ne.s32.totalorder (!%p2273_p0), %s2266_s15, 0 }
  0x4b   : > { %147 = sbr.rel (%p2273_p0) target bundleno = 475 (0x1db), region = 28  ;;  %s1281_s29 = sshll.u32 (!%p2273_p0), %s2096_s19, 9 }
  0x4c   : > { %s150_s30 = scalar_lea.sflag (!%p2273_p0), [#allocation3], %s2096_s19  ;;  %s2100_s3 = scalar_lea.vmem (!%p2273_p0), [#allocation2], %s1281_s29 }
  0x52   : > { %1906 = dma.done.wait (%p2274_p5), %s150_s30, 8192  }
  0x53   : > { %1908 = vsyncadd (%p2274_p5), %s150_s30, 4294959104  ;;  %p2275_p11 = scmp.eq.s32.totalorder %s1978_s13, 0 }
  0x55   : > { %1910 = dma.done.wait (%p2275_p11), [#allocation6], 4096   ;;  %p2276_p1 = pmov %p2275_p11 }
  0x56   : > { %v1675_v0 = vld [vmem:[#allocation5 + $0x40] sm:$0xff]   ;;  %v1679_v4 = vld [vmem:[#allocation5 + $0x48] sm:$0xff]   ;;  %v1683_v8 = vld [vmem:[#allocation5 + $0x50] sm:$0xff]   ;;  %s1283_s15 = sshll.u32 %s2096_s19, 8  ;;  %s1387_s27 = sshll.u32 %s1978_s13, 12 }
  0x57   : > { %1912 = vsyncadd (%p2276_p1), [#allocation6], 4294963200  ;;  %v1676_v1 = vld [vmem:[#allocation5 + $0xc0] sm:$0xff]   ;;  %1388 = vmatprep.subr.bf16.mxu0 %v1675_v0  ;;  %v1680_v5 = vld [vmem:[#allocation5 + $0xc8] sm:$0xff]   ;;  %s2175_s17 = scalar_lea.vmem [#allocation7], %s1283_s15  ;;  %s2212_s4 = scalar_lea.hbm %s2262_s2, %s1387_s27 }
  0x58   : > { %v1677_v2 = vld [vmem:[#allocation5] sm:$0xff]   ;;  %1500 = vmatprep.subr.bf16.mxu1 %v1676_v1  ;;  %v1681_v6 = vld [vmem:[#allocation5 + $0x8] sm:$0xff]   ;;  %v1684_v9 = vld [vmem:[#allocation5 + $0xd0] sm:$0xff]   ;;  %s1189_s22 = sshll.u32 %s2175_s17, 4  ;;  %s1176_s5 = scalar_lea.sflag [#allocation4], %s2096_s19  ;;  %s2214_s22 = int_to_ptr.vmem [resolvable:$true] %s1189_s22 }
  0x59   : > { %v1678_v3 = vld [vmem:[#allocation5 + $0x80] sm:$0xff]   ;;  %1389 = vmatpush3.bf16.msra.mxu0 %v1677_v2  ;;  %v1682_v7 = vld [vmem:[#allocation5 + $0x88] sm:$0xff]   ;;  %v1685_v10 = vld [vmem:[#allocation5 + $0x10] sm:$0xff]   ;;  %s1861_s13 = scalar_lea.vmem %s2214_s22, 4096  ;;  %s1939_s6 = smov [#allocation7]  }
  0x5a   : > { %1501 = vmatpush3.bf16.msra.mxu1 %v1678_v3  ;;  %1390 = vmatprep.subr.bf16.mxu0 %v1679_v4  ;;  %v1686_v11 = vld [vmem:[#allocation5 + $0x90] sm:$0xff]   ;;  %v1687_v12 = vld [vmem:[#allocation5 + $0x58] sm:$0xff]   ;;  %v1691_v16 = vld [vmem:[#allocation5 + $0x60] sm:$0xff]   ;;  %p1862_p4 = scmp.ne.s32.totalorder %s2214_s22, %s1861_s13  ;;  %s1865_s7 = sshll.u32 %s1939_s6, 4  ;;  %s1866_s7 = int_to_ptr.vmem [resolvable:$false] %s1865_s7 }
  0x5b   : > { %1502 = vmatprep.subr.bf16.mxu1 %v1680_v5  ;;  %v1688_v13 = vld [vmem:[#allocation5 + $0xd8] sm:$0xff]   ;;  %v1692_v17 = vld [vmem:[#allocation5 + $0xe0] sm:$0xff]   ;;  %v1695_v20 = vld [vmem:[#allocation5 + $0x68] sm:$0xff]   ;;  %s1867_s18 = scalar_lea.vmem %s1866_s7, 8192  ;;  %p1868_p10 = scmp.lt.s32.totalorder %s2214_s22, %s1866_s7 }
  0x5c   : > { %v1689_v14 = vld [vmem:[#allocation5 + $0x18] sm:$0xff]   ;;  %v1693_v18 = vld [vmem:[#allocation5 + $0x20] sm:$0xff]   ;;  %v1696_v21 = vld [vmem:[#allocation5 + $0xe8] sm:$0xff]   ;;  %p1863_p6 = pnand %p1862_p4, %p2048_p12  ;;  %p1869_p13 = scmp.lt.s32.totalorder %s1867_s18, %s1861_s13 }
  0x5d   : > { %1391 = vmatpush3.bf16.msra.mxu0 %v1681_v6  ;;  %v1690_v15 = vld [vmem:[#allocation5 + $0x98] sm:$0xff]   ;;  %v1694_v19 = vld [vmem:[#allocation5 + $0xa0] sm:$0xff]   ;;  %v1697_v22 = vld [vmem:[#allocation5 + $0x28] sm:$0xff]  }
  0x5e   : > { %1503 = vmatpush3.bf16.msra.mxu1 %v1682_v7  ;;  %1392 = vmatprep.subr.bf16.mxu0 %v1683_v8  ;;  %v1698_v23 = vld [vmem:[#allocation5 + $0xa8] sm:$0xff]   ;;  %v1699_v24 = vld [vmem:[#allocation5 + $0x70] sm:$0xff]   ;;  %v1703_v28 = vld [vmem:[#allocation5 + $0x78] sm:$0xff]   ;;  %p1864_p8 = pneg %p1863_p6  ;;  %p1870_p3 = por %p1869_p13, %p1868_p10 }
  0x5f   : > { %1504 = vmatprep.subr.bf16.mxu1 %v1684_v9  ;;  %v1700_v25 = vld [vmem:[#allocation5 + $0xf0] sm:$0xff]   ;;  %v1704_v29 = vld [vmem:[#allocation5 + $0xf8] sm:$0xff]  }
  0x60   : > { %v1701_v26 = vld [vmem:[#allocation5 + $0x30] sm:$0xff]   ;;  %v1705_v30 = vld [vmem:[#allocation5 + $0x38] sm:$0xff]   ;;  %p1871_p7 = pnand %p1870_p3, %p1864_p8 }
  0x61   : > { %1393 = vmatpush3.bf16.msra.mxu0 %v1685_v10  ;;  %v1702_v27 = vld [vmem:[#allocation5 + $0xb0] sm:$0xff]   ;;  %v1706_v31 = vld [vmem:[#allocation5 + $0xb8] sm:$0xff]  }
  0x62   : > { %1505 = vmatpush3.bf16.msra.mxu1 %v1686_v11  ;;  %1394 = vmatprep.subr.bf16.mxu0 %v1687_v12  ;;  %v1707_v32 = vld [vmem:[%s2100_s3] ss:$16 sps:$4 sm:$0xff]   ;;  %v1709_v33 = vld [vmem:[%s2100_s3 + $0x4] ss:$16 sps:$4 sm:$0xff]   ;;  %v1710_v34 = vld [vmem:[%s2100_s3 + $0x8] ss:$16 sps:$4 sm:$0xff]  }
  0x63   : > { %1506 = vmatprep.subr.bf16.mxu1 %v1688_v13  ;;  %v1712_v35 = vld [vmem:[%s2100_s3 + $0xc] ss:$16 sps:$4 sm:$0xff]   ;;  %853 = vmatprep.mubr.bf16.mxu0 %v1709_v33  ;;  %v1713_v36 = vld [vmem:[%s2100_s3 + $0x24] ss:$16 sps:$4 sm:$0xff]   ;;  %v1717_v38 = vld [vmem:[%s2100_s3 + $0x20] ss:$16 sps:$4 sm:$0xff]  }
  0x64   : > { %1014 = vmatprep.mubr.bf16.mxu1 %v1712_v35  ;;  %v1715_v37 = vld [vmem:[%s2100_s3 + $0x2c] ss:$16 sps:$4 sm:$0xff]   ;;  %v1718_v39 = vld [vmem:[%s2100_s3 + $0x28] ss:$16 sps:$4 sm:$0xff]   ;;  %v1719_v40 = vld [vmem:[%s2100_s3 + $0x44] ss:$16 sps:$4 sm:$0xff]  }
  0x65   : > { %1395 = vmatpush3.bf16.msra.mxu0 %v1689_v14  ;;  %v1721_v41 = vld [vmem:[%s2100_s3 + $0x4c] ss:$16 sps:$4 sm:$0xff]   ;;  %v1723_v42 = vld [vmem:[%s2100_s3 + $0x40] ss:$16 sps:$4 sm:$0xff]   ;;  %v1724_v43 = vld [vmem:[%s2100_s3 + $0x48] ss:$16 sps:$4 sm:$0xff]  }
  0x66   : > { %1507 = vmatpush3.bf16.msra.mxu1 %v1690_v15  ;;  %1396 = vmatprep.subr.bf16.mxu0 %v1691_v16  ;;  %v1725_v44 = vld [vmem:[%s2100_s3 + $0x64] ss:$16 sps:$4 sm:$0xff]   ;;  %v1727_v45 = vld [vmem:[%s2100_s3 + $0x6c] ss:$16 sps:$4 sm:$0xff]   ;;  %v1729_v46 = vld [vmem:[%s2100_s3 + $0x60] ss:$16 sps:$4 sm:$0xff]  }
  0x67   : > { %1508 = vmatprep.subr.bf16.mxu1 %v1692_v17  ;;  %v1730_v47 = vld [vmem:[%s2100_s3 + $0x68] ss:$16 sps:$4 sm:$0xff]   ;;  %v1731_v48 = vld [vmem:[%s2100_s3 + $0x84] ss:$16 sps:$4 sm:$0xff]   ;;  %v1733_v49 = vld [vmem:[%s2100_s3 + $0x8c] ss:$16 sps:$4 sm:$0xff]  }
  0x68   : > { %v1735_v50 = vld [vmem:[%s2100_s3 + $0x80] ss:$16 sps:$4 sm:$0xff]   ;;  %v1736_v51 = vld [vmem:[%s2100_s3 + $0x88] ss:$16 sps:$4 sm:$0xff]   ;;  %v1737_v52 = vld [vmem:[%s2100_s3 + $0xa4] ss:$16 sps:$4 sm:$0xff]  }
  0x69   : > { %1397 = vmatpush3.bf16.msra.mxu0 %v1693_v18  ;;  %v1739_v53 = vld [vmem:[%s2100_s3 + $0xac] ss:$16 sps:$4 sm:$0xff]   ;;  %v1741_v54 = vld [vmem:[%s2100_s3 + $0xa0] ss:$16 sps:$4 sm:$0xff]   ;;  %v1742_v55 = vld [vmem:[%s2100_s3 + $0xa8] ss:$16 sps:$4 sm:$0xff]  }
  0x6a   : > { %1509 = vmatpush3.bf16.msra.mxu1 %v1694_v19  ;;  %1398 = vmatprep.subr.bf16.mxu0 %v1695_v20  ;;  %v1743_v56 = vld [vmem:[%s2100_s3 + $0xc4] ss:$16 sps:$4 sm:$0xff]   ;;  %v1745_v57 = vld [vmem:[%s2100_s3 + $0xcc] ss:$16 sps:$4 sm:$0xff]   ;;  %v1747_v58 = vld [vmem:[%s2100_s3 + $0xc0] ss:$16 sps:$4 sm:$0xff]  }
  0x6b   : > { %1510 = vmatprep.subr.bf16.mxu1 %v1696_v21  ;;  %v1748_v59 = vld [vmem:[%s2100_s3 + $0xc8] ss:$16 sps:$4 sm:$0xff]   ;;  %v1749_v60 = vld [vmem:[%s2100_s3 + $0xe4] ss:$16 sps:$4 sm:$0xff]   ;;  %v1751_v61 = vld [vmem:[%s2100_s3 + $0xec] ss:$16 sps:$4 sm:$0xff]  }
  0x6c   : > { %v1753_v62 = vld [vmem:[%s2100_s3 + $0xe0] ss:$16 sps:$4 sm:$0xff]   ;;  %v1754_v63 = vld [vmem:[%s2100_s3 + $0xe8] ss:$16 sps:$4 sm:$0xff]   ;;  %v1755_v0 = vld [vmem:[%s2100_s3 + $0x104] ss:$16 sps:$4 sm:$0xff]  }
  0x6d   : > { %1399 = vmatpush3.bf16.msra.mxu0 %v1697_v22  ;;  %v1757_v1 = vld [vmem:[%s2100_s3 + $0x10c] ss:$16 sps:$4 sm:$0xff]   ;;  %v1759_v2 = vld [vmem:[%s2100_s3 + $0x100] ss:$16 sps:$4 sm:$0xff]   ;;  %v1760_v3 = vld [vmem:[%s2100_s3 + $0x108] ss:$16 sps:$4 sm:$0xff]  }
  0x6e   : > { %1511 = vmatpush3.bf16.msra.mxu1 %v1698_v23  ;;  %1400 = vmatprep.subr.bf16.mxu0 %v1699_v24  ;;  %v1761_v4 = vld [vmem:[%s2100_s3 + $0x124] ss:$16 sps:$4 sm:$0xff]   ;;  %v1763_v5 = vld [vmem:[%s2100_s3 + $0x12c] ss:$16 sps:$4 sm:$0xff]   ;;  %v1765_v6 = vld [vmem:[%s2100_s3 + $0x120] ss:$16 sps:$4 sm:$0xff]  }
  0x6f   : > { %1512 = vmatprep.subr.bf16.mxu1 %v1700_v25  ;;  %v1766_v7 = vld [vmem:[%s2100_s3 + $0x128] ss:$16 sps:$4 sm:$0xff]   ;;  %v1767_v8 = vld [vmem:[%s2100_s3 + $0x144] ss:$16 sps:$4 sm:$0xff]   ;;  %v1769_v9 = vld [vmem:[%s2100_s3 + $0x14c] ss:$16 sps:$4 sm:$0xff]  }
  0x70   : > { %v1771_v10 = vld [vmem:[%s2100_s3 + $0x140] ss:$16 sps:$4 sm:$0xff]   ;;  %v1772_v11 = vld [vmem:[%s2100_s3 + $0x148] ss:$16 sps:$4 sm:$0xff]   ;;  %v1773_v12 = vld [vmem:[%s2100_s3 + $0x164] ss:$16 sps:$4 sm:$0xff]  }
  0x71   : > { %1401 = vmatpush3.bf16.msra.mxu0 %v1701_v26  ;;  %v1775_v13 = vld [vmem:[%s2100_s3 + $0x16c] ss:$16 sps:$4 sm:$0xff]   ;;  %v1777_v14 = vld [vmem:[%s2100_s3 + $0x160] ss:$16 sps:$4 sm:$0xff]   ;;  %v1778_v15 = vld [vmem:[%s2100_s3 + $0x168] ss:$16 sps:$4 sm:$0xff]  }
  0x72   : > { %1513 = vmatpush3.bf16.msra.mxu1 %v1702_v27  ;;  %1402 = vmatprep.subr.bf16.mxu0 %v1703_v28  ;;  %v1779_v16 = vld [vmem:[%s2100_s3 + $0x184] ss:$16 sps:$4 sm:$0xff]   ;;  %v1781_v17 = vld [vmem:[%s2100_s3 + $0x18c] ss:$16 sps:$4 sm:$0xff]   ;;  %v1783_v18 = vld [vmem:[%s2100_s3 + $0x180] ss:$16 sps:$4 sm:$0xff]  }
  0x73   : > { %1514 = vmatprep.subr.bf16.mxu1 %v1704_v29  ;;  %v1784_v19 = vld [vmem:[%s2100_s3 + $0x188] ss:$16 sps:$4 sm:$0xff]   ;;  %v1785_v20 = vld [vmem:[%s2100_s3 + $0x1a4] ss:$16 sps:$4 sm:$0xff]   ;;  %v1787_v21 = vld [vmem:[%s2100_s3 + $0x1ac] ss:$16 sps:$4 sm:$0xff]  }
  0x74   : > { %v1789_v22 = vld [vmem:[%s2100_s3 + $0x1a0] ss:$16 sps:$4 sm:$0xff]   ;;  %v1790_v23 = vld [vmem:[%s2100_s3 + $0x1a8] ss:$16 sps:$4 sm:$0xff]   ;;  %v1791_v24 = vld [vmem:[%s2100_s3 + $0x1c4] ss:$16 sps:$4 sm:$0xff]  }
  0x75   : > { %1403 = vmatpush3.bf16.msra.mxu0 %v1705_v30  ;;  %v1793_v25 = vld [vmem:[%s2100_s3 + $0x1cc] ss:$16 sps:$4 sm:$0xff]   ;;  %v1795_v26 = vld [vmem:[%s2100_s3 + $0x1c0] ss:$16 sps:$4 sm:$0xff]   ;;  %v1796_v27 = vld [vmem:[%s2100_s3 + $0x1c8] ss:$16 sps:$4 sm:$0xff]  }
  0x76   : > { %1515 = vmatpush3.bf16.msra.mxu1 %v1706_v31  ;;  %v1797_v28 = vld [vmem:[%s2100_s3 + $0x1e4] ss:$16 sps:$4 sm:$0xff]   ;;  %v1799_v29 = vld [vmem:[%s2100_s3 + $0x1ec] ss:$16 sps:$4 sm:$0xff]   ;;  %v1801_v30 = vld [vmem:[%s2100_s3 + $0x1e0] ss:$16 sps:$4 sm:$0xff]  }
  0x77   : > { %v1802_v31 = vld [vmem:[%s2100_s3 + $0x1e8] ss:$16 sps:$4 sm:$0xff]  }
  0x78   : > { %854 = vmatmul.mubr.bf16.vlgmr.msra.gmra.mrb[0].mxu0 %v1707_v32 }
  0x79   : > { %1015 = vmatmul.mubr.bf16.vlgmr.msra.gmra.mrb[0].mxu1 %v1710_v34  ;;  %861 = vmatprep.mubr.bf16.mxu0 %v1713_v36 }
  0x7a   : > { %1022 = vmatprep.mubr.bf16.mxu1 %v1715_v37 }
  0x80   : > { %862 = vmatmul.mubr.bf16.gmra.mrb[4].mxu0 %v1717_v38 }
  0x81   : > { %1023 = vmatmul.mubr.bf16.gmra.mrb[4].mxu1 %v1718_v39  ;;  %869 = vmatprep.mubr.bf16.mxu0 %v1719_v40 }
  0x82   : > { %1030 = vmatprep.mubr.bf16.mxu1 %v1721_v41 }
  0x88   : > { %870 = vmatmul.mubr.bf16.gmra.mrb[8].mxu0 %v1723_v42 }
  0x89   : > { %1031 = vmatmul.mubr.bf16.gmra.mrb[8].mxu1 %v1724_v43  ;;  %877 = vmatprep.mubr.bf16.mxu0 %v1725_v44 }
  0x8a   : > { %1038 = vmatprep.mubr.bf16.mxu1 %v1727_v45 }
  0x90   : > { %878 = vmatmul.mubr.bf16.gmra.mrb[12].mxu0 %v1729_v46 }
  0x91   : > { %1039 = vmatmul.mubr.bf16.gmra.mrb[12].mxu1 %v1730_v47  ;;  %885 = vmatprep.mubr.bf16.mxu0 %v1731_v48 }
  0x92   : > { %1046 = vmatprep.mubr.bf16.mxu1 %v1733_v49 }
  0x98   : > { %886 = vmatmul.mubr.bf16.gmra.mrb[16].mxu0 %v1735_v50 }
  0x99   : > { %1047 = vmatmul.mubr.bf16.gmra.mrb[16].mxu1 %v1736_v51  ;;  %893 = vmatprep.mubr.bf16.mxu0 %v1737_v52 }
  0x9a   : > { %1054 = vmatprep.mubr.bf16.mxu1 %v1739_v53 }
  0xa0   : > { %894 = vmatmul.mubr.bf16.gmra.mrb[20].mxu0 %v1741_v54 }
  0xa1   : > { %1055 = vmatmul.mubr.bf16.gmra.mrb[20].mxu1 %v1742_v55  ;;  %901 = vmatprep.mubr.bf16.mxu0 %v1743_v56 }
  0xa2   : > { %1062 = vmatprep.mubr.bf16.mxu1 %v1745_v57 }
  0xa8   : > { %902 = vmatmul.mubr.bf16.gmra.mrb[24].mxu0 %v1747_v58 }
  0xa9   : > { %1063 = vmatmul.mubr.bf16.gmra.mrb[24].mxu1 %v1748_v59  ;;  %909 = vmatprep.mubr.bf16.mxu0 %v1749_v60 }
  0xaa   : > { %1070 = vmatprep.mubr.bf16.mxu1 %v1751_v61 }
  0xb0   : > { %910 = vmatmul.mubr.bf16.gmra.mrb[28].mxu0 %v1753_v62 }
  0xb1   : > { %1071 = vmatmul.mubr.bf16.gmra.mrb[28].mxu1 %v1754_v63  ;;  %917 = vmatprep.mubr.bf16.mxu0 %v1755_v0 }
  0xb2   : > { %1078 = vmatprep.mubr.bf16.mxu1 %v1757_v1 }
  0xb8   : > { %918 = vmatmul.mubr.bf16.gmra.mrb[32].mxu0 %v1759_v2 }
  0xb9   : > { %1079 = vmatmul.mubr.bf16.gmra.mrb[32].mxu1 %v1760_v3  ;;  %925 = vmatprep.mubr.bf16.mxu0 %v1761_v4 }
  0xba   : > { %1086 = vmatprep.mubr.bf16.mxu1 %v1763_v5 }
  0xc0   : > { %926 = vmatmul.mubr.bf16.gmra.mrb[36].mxu0 %v1765_v6 }
  0xc1   : > { %1087 = vmatmul.mubr.bf16.gmra.mrb[36].mxu1 %v1766_v7  ;;  %933 = vmatprep.mubr.bf16.mxu0 %v1767_v8 }
  0xc2   : > { %1094 = vmatprep.mubr.bf16.mxu1 %v1769_v9 }
  0xc8   : > { %934 = vmatmul.mubr.bf16.gmra.mrb[40].mxu0 %v1771_v10 }
  0xc9   : > { %1095 = vmatmul.mubr.bf16.gmra.mrb[40].mxu1 %v1772_v11  ;;  %941 = vmatprep.mubr.bf16.mxu0 %v1773_v12 }
  0xca   : > { %1102 = vmatprep.mubr.bf16.mxu1 %v1775_v13 }
  0xd0   : > { %942 = vmatmul.mubr.bf16.gmra.mrb[44].mxu0 %v1777_v14 }
  0xd1   : > { %1103 = vmatmul.mubr.bf16.gmra.mrb[44].mxu1 %v1778_v15  ;;  %949 = vmatprep.mubr.bf16.mxu0 %v1779_v16 }
  0xd2   : > { %1110 = vmatprep.mubr.bf16.mxu1 %v1781_v17 }
  0xd8   : > { %950 = vmatmul.mubr.bf16.gmra.mrb[48].mxu0 %v1783_v18 }
  0xd9   : > { %1111 = vmatmul.mubr.bf16.gmra.mrb[48].mxu1 %v1784_v19  ;;  %957 = vmatprep.mubr.bf16.mxu0 %v1785_v20 }
  0xda   : > { %1118 = vmatprep.mubr.bf16.mxu1 %v1787_v21 }
  0xe0   : > { %958 = vmatmul.mubr.bf16.gmra.mrb[52].mxu0 %v1789_v22 }
  0xe1   : > { %1119 = vmatmul.mubr.bf16.gmra.mrb[52].mxu1 %v1790_v23  ;;  %965 = vmatprep.mubr.bf16.mxu0 %v1791_v24 }
  0xe2   : > { %1126 = vmatprep.mubr.bf16.mxu1 %v1793_v25 }
  0xe8   : > { %966 = vmatmul.mubr.bf16.gmra.mrb[56].mxu0 %v1795_v26 }
  0xe9   : > { %1127 = vmatmul.mubr.bf16.gmra.mrb[56].mxu1 %v1796_v27  ;;  %973 = vmatprep.mubr.bf16.mxu0 %v1797_v28 }
  0xea   : > { %1134 = vmatprep.mubr.bf16.mxu1 %v1799_v29 }
  0xf0   : > { %974 = vmatmul.mubr.bf16.gmra.mrb[60].mxu0 %v1801_v30 }
  0xf1   : > { %1135 = vmatmul.mubr.bf16.gmra.mrb[60].mxu1 %v1802_v31 }
 0x14b   : > { %v1404_v32 = vpop.f32.mrb[0].mxu0 }
 0x14c   : > { %v1516_v33 = vpop.f32.mrb[0].mxu1  ;;  %v1405_v34 = vpop.f32.mrb[1].mxu0 }
 0x14d   : > { %v1406_v35 = vadd.f32 %v1405_v34, %v1404_v32  ;;  %v1517_v36 = vpop.f32.mrb[1].mxu1  ;;  %v1407_v37 = vpop.f32.mrb[2].mxu0 }
 0x14e   : > { %v1518_v38 = vadd.f32 %v1517_v36, %v1516_v33  ;;  %v1519_v39 = vpop.f32.mrb[2].mxu1  ;;  %v1408_v40 = vpop.f32.mrb[3].mxu0 }
 0x14f   : > { %v1409_v41 = vadd.f32 %v1408_v40, %v1407_v37  ;;  %v1520_v42 = vpop.f32.mrb[3].mxu1 }
 0x150   : > { %v1017_v43 = vadd.f32 %v1518_v38, %v1406_v35  ;;  %v1521_v44 = vadd.f32 %v1520_v42, %v1519_v39 }
 0x152   : > { %1143 = vst [vmem:[%s2175_s17] sm:$0xff] %v1017_v43  ;;  %v1020_v45 = vadd.f32 %v1521_v44, %v1409_v41 }
 0x153   : > { %v1410_v46 = vpop.f32.mrb[4].mxu0 }
 0x154   : > { %1144 = vst [vmem:[%s2175_s17 + $0x8] sm:$0xff] %v1020_v45  ;;  %v1522_v47 = vpop.f32.mrb[4].mxu1  ;;  %v1411_v48 = vpop.f32.mrb[5].mxu0 }
 0x155   : > { %v1412_v49 = vadd.f32 %v1411_v48, %v1410_v46  ;;  %v1523_v50 = vpop.f32.mrb[5].mxu1  ;;  %v1413_v51 = vpop.f32.mrb[6].mxu0 }
 0x156   : > { %v1524_v52 = vadd.f32 %v1523_v50, %v1522_v47  ;;  %v1525_v53 = vpop.f32.mrb[6].mxu1  ;;  %v1414_v54 = vpop.f32.mrb[7].mxu0 }
 0x157   : > { %v1415_v55 = vadd.f32 %v1414_v54, %v1413_v51  ;;  %v1526_v56 = vpop.f32.mrb[7].mxu1 }
 0x158   : > { %v1025_v57 = vadd.f32 %v1524_v52, %v1412_v49  ;;  %v1527_v58 = vadd.f32 %v1526_v56, %v1525_v53 }
 0x15a   : > { %1145 = vst [vmem:[%s2175_s17 + $0x10] sm:$0xff] %v1025_v57  ;;  %v1028_v59 = vadd.f32 %v1527_v58, %v1415_v55 }
 0x15b   : > { %v1416_v60 = vpop.f32.mrb[8].mxu0 }
 0x15c   : > { %1146 = vst [vmem:[%s2175_s17 + $0x18] sm:$0xff] %v1028_v59  ;;  %v1528_v61 = vpop.f32.mrb[8].mxu1  ;;  %v1417_v62 = vpop.f32.mrb[9].mxu0 }
 0x15d   : > { %v1418_v63 = vadd.f32 %v1417_v62, %v1416_v60  ;;  %v1529_v0 = vpop.f32.mrb[9].mxu1  ;;  %v1419_v1 = vpop.f32.mrb[10].mxu0 }
 0x15e   : > { %v1530_v2 = vadd.f32 %v1529_v0, %v1528_v61  ;;  %v1531_v3 = vpop.f32.mrb[10].mxu1  ;;  %v1420_v4 = vpop.f32.mrb[11].mxu0 }
 0x15f   : > { %v1421_v5 = vadd.f32 %v1420_v4, %v1419_v1  ;;  %v1532_v6 = vpop.f32.mrb[11].mxu1 }
 0x160   : > { %v1033_v7 = vadd.f32 %v1530_v2, %v1418_v63  ;;  %v1533_v8 = vadd.f32 %v1532_v6, %v1531_v3 }
 0x162   : > { %1147 = vst [vmem:[%s2175_s17 + $0x20] sm:$0xff] %v1033_v7  ;;  %v1036_v9 = vadd.f32 %v1533_v8, %v1421_v5 }
 0x163   : > { %v1422_v10 = vpop.f32.mrb[12].mxu0 }
 0x164   : > { %1148 = vst [vmem:[%s2175_s17 + $0x28] sm:$0xff] %v1036_v9  ;;  %v1534_v11 = vpop.f32.mrb[12].mxu1  ;;  %v1423_v12 = vpop.f32.mrb[13].mxu0 }
 0x165   : > { %v1424_v13 = vadd.f32 %v1423_v12, %v1422_v10  ;;  %v1535_v14 = vpop.f32.mrb[13].mxu1  ;;  %v1425_v15 = vpop.f32.mrb[14].mxu0 }
 0x166   : > { %v1536_v16 = vadd.f32 %v1535_v14, %v1534_v11  ;;  %v1537_v17 = vpop.f32.mrb[14].mxu1  ;;  %v1426_v18 = vpop.f32.mrb[15].mxu0 }
 0x167   : > { %v1427_v19 = vadd.f32 %v1426_v18, %v1425_v15  ;;  %v1538_v20 = vpop.f32.mrb[15].mxu1 }
 0x168   : > { %v1041_v21 = vadd.f32 %v1536_v16, %v1424_v13  ;;  %v1539_v22 = vadd.f32 %v1538_v20, %v1537_v17 }
 0x16a   : > { %1149 = vst [vmem:[%s2175_s17 + $0x30] sm:$0xff] %v1041_v21  ;;  %v1044_v23 = vadd.f32 %v1539_v22, %v1427_v19 }
 0x16b   : > { %v1428_v24 = vpop.f32.mrb[16].mxu0 }
 0x16c   : > { %1150 = vst [vmem:[%s2175_s17 + $0x38] sm:$0xff] %v1044_v23  ;;  %v1540_v25 = vpop.f32.mrb[16].mxu1  ;;  %v1429_v26 = vpop.f32.mrb[17].mxu0 }
 0x16d   : > { %v1430_v27 = vadd.f32 %v1429_v26, %v1428_v24  ;;  %v1541_v28 = vpop.f32.mrb[17].mxu1  ;;  %v1431_v29 = vpop.f32.mrb[18].mxu0 }
 0x16e   : > { %v1542_v30 = vadd.f32 %v1541_v28, %v1540_v25  ;;  %v1543_v31 = vpop.f32.mrb[18].mxu1  ;;  %v1432_v32 = vpop.f32.mrb[19].mxu0 }
 0x16f   : > { %v1433_v33 = vadd.f32 %v1432_v32, %v1431_v29  ;;  %v1544_v34 = vpop.f32.mrb[19].mxu1 }
 0x170   : > { %v1049_v35 = vadd.f32 %v1542_v30, %v1430_v27  ;;  %v1545_v36 = vadd.f32 %v1544_v34, %v1543_v31 }
 0x172   : > { %1151 = vst [vmem:[%s2175_s17 + $0x40] sm:$0xff] %v1049_v35  ;;  %v1052_v37 = vadd.f32 %v1545_v36, %v1433_v33 }
 0x173   : > { %v1434_v38 = vpop.f32.mrb[20].mxu0 }
 0x174   : > { %1152 = vst [vmem:[%s2175_s17 + $0x48] sm:$0xff] %v1052_v37  ;;  %v1546_v39 = vpop.f32.mrb[20].mxu1  ;;  %v1435_v40 = vpop.f32.mrb[21].mxu0 }
 0x175   : > { %v1436_v41 = vadd.f32 %v1435_v40, %v1434_v38  ;;  %v1547_v42 = vpop.f32.mrb[21].mxu1  ;;  %v1437_v43 = vpop.f32.mrb[22].mxu0 }
 0x176   : > { %v1548_v44 = vadd.f32 %v1547_v42, %v1546_v39  ;;  %v1549_v45 = vpop.f32.mrb[22].mxu1  ;;  %v1438_v46 = vpop.f32.mrb[23].mxu0 }
 0x177   : > { %v1439_v47 = vadd.f32 %v1438_v46, %v1437_v43  ;;  %v1550_v48 = vpop.f32.mrb[23].mxu1 }
 0x178   : > { %v1057_v49 = vadd.f32 %v1548_v44, %v1436_v41  ;;  %v1551_v50 = vadd.f32 %v1550_v48, %v1549_v45 }
 0x17a   : > { %1153 = vst [vmem:[%s2175_s17 + $0x50] sm:$0xff] %v1057_v49  ;;  %v1060_v51 = vadd.f32 %v1551_v50, %v1439_v47 }
 0x17b   : > { %v1440_v52 = vpop.f32.mrb[24].mxu0 }
 0x17c   : > { %1154 = vst [vmem:[%s2175_s17 + $0x58] sm:$0xff] %v1060_v51  ;;  %v1552_v53 = vpop.f32.mrb[24].mxu1  ;;  %v1441_v54 = vpop.f32.mrb[25].mxu0 }
 0x17d   : > { %v1442_v55 = vadd.f32 %v1441_v54, %v1440_v52  ;;  %v1553_v56 = vpop.f32.mrb[25].mxu1  ;;  %v1443_v57 = vpop.f32.mrb[26].mxu0 }
 0x17e   : > { %v1554_v58 = vadd.f32 %v1553_v56, %v1552_v53  ;;  %v1555_v59 = vpop.f32.mrb[26].mxu1  ;;  %v1444_v60 = vpop.f32.mrb[27].mxu0 }
 0x17f   : > { %v1445_v61 = vadd.f32 %v1444_v60, %v1443_v57  ;;  %v1556_v62 = vpop.f32.mrb[27].mxu1 }
 0x180   : > { %v1065_v63 = vadd.f32 %v1554_v58, %v1442_v55  ;;  %v1557_v0 = vadd.f32 %v1556_v62, %v1555_v59 }
 0x182   : > { %1155 = vst [vmem:[%s2175_s17 + $0x60] sm:$0xff] %v1065_v63  ;;  %v1068_v1 = vadd.f32 %v1557_v0, %v1445_v61 }
 0x183   : > { %v1446_v2 = vpop.f32.mrb[28].mxu0 }
 0x184   : > { %1156 = vst [vmem:[%s2175_s17 + $0x68] sm:$0xff] %v1068_v1  ;;  %v1558_v3 = vpop.f32.mrb[28].mxu1  ;;  %v1447_v4 = vpop.f32.mrb[29].mxu0 }
 0x185   : > { %v1448_v5 = vadd.f32 %v1447_v4, %v1446_v2  ;;  %v1559_v6 = vpop.f32.mrb[29].mxu1  ;;  %v1449_v7 = vpop.f32.mrb[30].mxu0 }
 0x186   : > { %v1560_v8 = vadd.f32 %v1559_v6, %v1558_v3  ;;  %v1561_v9 = vpop.f32.mrb[30].mxu1  ;;  %v1450_v10 = vpop.f32.mrb[31].mxu0 }
 0x187   : > { %v1451_v11 = vadd.f32 %v1450_v10, %v1449_v7  ;;  %v1562_v12 = vpop.f32.mrb[31].mxu1 }
 0x188   : > { %v1073_v13 = vadd.f32 %v1560_v8, %v1448_v5  ;;  %v1563_v14 = vadd.f32 %v1562_v12, %v1561_v9 }
 0x18a   : > { %1157 = vst [vmem:[%s2175_s17 + $0x70] sm:$0xff] %v1073_v13  ;;  %v1076_v15 = vadd.f32 %v1563_v14, %v1451_v11 }
 0x18b   : > { %v1452_v16 = vpop.f32.mrb[32].mxu0 }
 0x18c   : > { %1158 = vst [vmem:[%s2175_s17 + $0x78] sm:$0xff] %v1076_v15  ;;  %v1564_v17 = vpop.f32.mrb[32].mxu1  ;;  %v1453_v18 = vpop.f32.mrb[33].mxu0 }
 0x18d   : > { %v1454_v19 = vadd.f32 %v1453_v18, %v1452_v16  ;;  %v1565_v20 = vpop.f32.mrb[33].mxu1  ;;  %v1455_v21 = vpop.f32.mrb[34].mxu0 }
 0x18e   : > { %v1566_v22 = vadd.f32 %v1565_v20, %v1564_v17  ;;  %v1567_v23 = vpop.f32.mrb[34].mxu1  ;;  %v1456_v24 = vpop.f32.mrb[35].mxu0 }
 0x18f   : > { %v1457_v25 = vadd.f32 %v1456_v24, %v1455_v21  ;;  %v1568_v26 = vpop.f32.mrb[35].mxu1 }
 0x190   : > { %v1081_v27 = vadd.f32 %v1566_v22, %v1454_v19  ;;  %v1569_v28 = vadd.f32 %v1568_v26, %v1567_v23 }
 0x192   : > { %1159 = vst [vmem:[%s2175_s17 + $0x80] sm:$0xff] %v1081_v27  ;;  %v1084_v29 = vadd.f32 %v1569_v28, %v1457_v25 }
 0x193   : > { %v1458_v30 = vpop.f32.mrb[36].mxu0 }
 0x194   : > { %1160 = vst [vmem:[%s2175_s17 + $0x88] sm:$0xff] %v1084_v29  ;;  %v1570_v31 = vpop.f32.mrb[36].mxu1  ;;  %v1459_v32 = vpop.f32.mrb[37].mxu0 }
 0x195   : > { %v1460_v33 = vadd.f32 %v1459_v32, %v1458_v30  ;;  %v1571_v34 = vpop.f32.mrb[37].mxu1  ;;  %v1461_v35 = vpop.f32.mrb[38].mxu0 }
 0x196   : > { %v1572_v36 = vadd.f32 %v1571_v34, %v1570_v31  ;;  %v1573_v37 = vpop.f32.mrb[38].mxu1  ;;  %v1462_v38 = vpop.f32.mrb[39].mxu0 }
 0x197   : > { %v1463_v39 = vadd.f32 %v1462_v38, %v1461_v35  ;;  %v1574_v40 = vpop.f32.mrb[39].mxu1 }
 0x198   : > { %v1089_v41 = vadd.f32 %v1572_v36, %v1460_v33  ;;  %v1575_v42 = vadd.f32 %v1574_v40, %v1573_v37 }
 0x19a   : > { %1161 = vst [vmem:[%s2175_s17 + $0x90] sm:$0xff] %v1089_v41  ;;  %v1092_v43 = vadd.f32 %v1575_v42, %v1463_v39 }
 0x19b   : > { %v1464_v44 = vpop.f32.mrb[40].mxu0 }
 0x19c   : > { %1162 = vst [vmem:[%s2175_s17 + $0x98] sm:$0xff] %v1092_v43  ;;  %v1576_v45 = vpop.f32.mrb[40].mxu1  ;;  %v1465_v46 = vpop.f32.mrb[41].mxu0 }
 0x19d   : > { %v1466_v47 = vadd.f32 %v1465_v46, %v1464_v44  ;;  %v1577_v48 = vpop.f32.mrb[41].mxu1  ;;  %v1467_v49 = vpop.f32.mrb[42].mxu0 }
 0x19e   : > { %v1578_v50 = vadd.f32 %v1577_v48, %v1576_v45  ;;  %v1579_v51 = vpop.f32.mrb[42].mxu1  ;;  %v1468_v52 = vpop.f32.mrb[43].mxu0 }
 0x19f   : > { %v1469_v53 = vadd.f32 %v1468_v52, %v1467_v49  ;;  %v1580_v54 = vpop.f32.mrb[43].mxu1 }
 0x1a0   : > { %v1097_v55 = vadd.f32 %v1578_v50, %v1466_v47  ;;  %v1581_v56 = vadd.f32 %v1580_v54, %v1579_v51 }
 0x1a2   : > { %1163 = vst [vmem:[%s2175_s17 + $0xa0] sm:$0xff] %v1097_v55  ;;  %v1100_v57 = vadd.f32 %v1581_v56, %v1469_v53 }
 0x1a3   : > { %v1470_v58 = vpop.f32.mrb[44].mxu0 }
 0x1a4   : > { %1164 = vst [vmem:[%s2175_s17 + $0xa8] sm:$0xff] %v1100_v57  ;;  %v1582_v59 = vpop.f32.mrb[44].mxu1  ;;  %v1471_v60 = vpop.f32.mrb[45].mxu0 }
 0x1a5   : > { %v1472_v61 = vadd.f32 %v1471_v60, %v1470_v58  ;;  %v1583_v62 = vpop.f32.mrb[45].mxu1  ;;  %v1473_v63 = vpop.f32.mrb[46].mxu0 }
 0x1a6   : > { %v1584_v0 = vadd.f32 %v1583_v62, %v1582_v59  ;;  %v1585_v1 = vpop.f32.mrb[46].mxu1  ;;  %v1474_v2 = vpop.f32.mrb[47].mxu0 }
 0x1a7   : > { %v1475_v3 = vadd.f32 %v1474_v2, %v1473_v63  ;;  %v1586_v4 = vpop.f32.mrb[47].mxu1 }
 0x1a8   : > { %v1105_v5 = vadd.f32 %v1584_v0, %v1472_v61  ;;  %v1587_v6 = vadd.f32 %v1586_v4, %v1585_v1 }
 0x1aa   : > { %1165 = vst [vmem:[%s2175_s17 + $0xb0] sm:$0xff] %v1105_v5  ;;  %v1108_v7 = vadd.f32 %v1587_v6, %v1475_v3 }
 0x1ab   : > { %v1476_v8 = vpop.f32.mrb[48].mxu0 }
 0x1ac   : > { %1166 = vst [vmem:[%s2175_s17 + $0xb8] sm:$0xff] %v1108_v7  ;;  %v1588_v9 = vpop.f32.mrb[48].mxu1  ;;  %v1477_v10 = vpop.f32.mrb[49].mxu0 }
 0x1ad   : > { %v1478_v11 = vadd.f32 %v1477_v10, %v1476_v8  ;;  %v1589_v12 = vpop.f32.mrb[49].mxu1  ;;  %v1479_v13 = vpop.f32.mrb[50].mxu0 }
 0x1ae   : > { %v1590_v14 = vadd.f32 %v1589_v12, %v1588_v9  ;;  %v1591_v15 = vpop.f32.mrb[50].mxu1  ;;  %v1480_v16 = vpop.f32.mrb[51].mxu0 }
 0x1af   : > { %v1481_v17 = vadd.f32 %v1480_v16, %v1479_v13  ;;  %v1592_v18 = vpop.f32.mrb[51].mxu1 }
 0x1b0   : > { %v1113_v19 = vadd.f32 %v1590_v14, %v1478_v11  ;;  %v1593_v20 = vadd.f32 %v1592_v18, %v1591_v15 }
 0x1b2   : > { %1167 = vst [vmem:[%s2175_s17 + $0xc0] sm:$0xff] %v1113_v19  ;;  %v1116_v21 = vadd.f32 %v1593_v20, %v1481_v17 }
 0x1b3   : > { %v1482_v22 = vpop.f32.mrb[52].mxu0 }
 0x1b4   : > { %1168 = vst [vmem:[%s2175_s17 + $0xc8] sm:$0xff] %v1116_v21  ;;  %v1594_v23 = vpop.f32.mrb[52].mxu1  ;;  %v1483_v24 = vpop.f32.mrb[53].mxu0 }
 0x1b5   : > { %v1484_v25 = vadd.f32 %v1483_v24, %v1482_v22  ;;  %v1595_v26 = vpop.f32.mrb[53].mxu1  ;;  %v1485_v27 = vpop.f32.mrb[54].mxu0 }
 0x1b6   : > { %v1596_v28 = vadd.f32 %v1595_v26, %v1594_v23  ;;  %v1597_v29 = vpop.f32.mrb[54].mxu1  ;;  %v1486_v30 = vpop.f32.mrb[55].mxu0 }
 0x1b7   : > { %v1487_v31 = vadd.f32 %v1486_v30, %v1485_v27  ;;  %v1598_v32 = vpop.f32.mrb[55].mxu1 }
 0x1b8   : > { %v1121_v33 = vadd.f32 %v1596_v28, %v1484_v25  ;;  %v1599_v34 = vadd.f32 %v1598_v32, %v1597_v29 }
 0x1ba   : > { %1169 = vst [vmem:[%s2175_s17 + $0xd0] sm:$0xff] %v1121_v33  ;;  %v1124_v35 = vadd.f32 %v1599_v34, %v1487_v31 }
 0x1bb   : > { %v1488_v36 = vpop.f32.mrb[56].mxu0 }
 0x1bc   : > { %1170 = vst [vmem:[%s2175_s17 + $0xd8] sm:$0xff] %v1124_v35  ;;  %v1600_v37 = vpop.f32.mrb[56].mxu1  ;;  %v1489_v38 = vpop.f32.mrb[57].mxu0 }
 0x1bd   : > { %v1490_v39 = vadd.f32 %v1489_v38, %v1488_v36  ;;  %v1601_v40 = vpop.f32.mrb[57].mxu1  ;;  %v1491_v41 = vpop.f32.mrb[58].mxu0 }
 0x1be   : > { %v1602_v42 = vadd.f32 %v1601_v40, %v1600_v37  ;;  %v1603_v43 = vpop.f32.mrb[58].mxu1  ;;  %v1492_v44 = vpop.f32.mrb[59].mxu0 }
 0x1bf   : > { %v1493_v45 = vadd.f32 %v1492_v44, %v1491_v41  ;;  %v1604_v46 = vpop.f32.mrb[59].mxu1 }
 0x1c0   : > { %v1129_v47 = vadd.f32 %v1602_v42, %v1490_v39  ;;  %v1605_v48 = vadd.f32 %v1604_v46, %v1603_v43 }
 0x1c2   : > { %1171 = vst [vmem:[%s2175_s17 + $0xe0] sm:$0xff] %v1129_v47  ;;  %v1132_v49 = vadd.f32 %v1605_v48, %v1493_v45 }
 0x1c3   : > { %v1494_v50 = vpop.f32.mrb[60].mxu0 }
 0x1c4   : > { %1172 = vst [vmem:[%s2175_s17 + $0xe8] sm:$0xff] %v1132_v49  ;;  %v1606_v51 = vpop.f32.mrb[60].mxu1  ;;  %v1495_v52 = vpop.f32.mrb[61].mxu0 }
 0x1c5   : > { %v1496_v53 = vadd.f32 %v1495_v52, %v1494_v50  ;;  %v1607_v54 = vpop.f32.mrb[61].mxu1  ;;  %v1497_v55 = vpop.f32.mrb[62].mxu0 }
 0x1c6   : > { %v1608_v56 = vadd.f32 %v1607_v54, %v1606_v51  ;;  %v1609_v57 = vpop.f32.mrb[62].mxu1  ;;  %v1498_v58 = vpop.f32.mrb[63].mxu0 }
 0x1c7   : > { %v1499_v59 = vadd.f32 %v1498_v58, %v1497_v55  ;;  %v1610_v60 = vpop.f32.mrb[63].mxu1 }
 0x1c8   : > { %v1137_v61 = vadd.f32 %v1608_v56, %v1496_v53  ;;  %v1611_v62 = vadd.f32 %v1610_v60, %v1609_v57 }
 0x1ca   : > { %1173 = vst [vmem:[%s2175_s17 + $0xf0] sm:$0xff] %v1137_v61  ;;  %v1140_v63 = vadd.f32 %v1611_v62, %v1499_v59 }
 0x1cc   : > { %1174 = vst [vmem:[%s2175_s17 + $0xf8] sm:$0xff] %v1140_v63 }
 0x1cd   : > { %1874 = shalt.err (!%p1871_p7)
}
 0x1ce   : > { %s1875_s24 = scalar_lea.hbm %s2212_s4, 4096  ;;  %s1879_s26 = scalar_lea.hbm %s2262_s2, 8192 }
 0x1cf   : > { %p1876_p9 = scmp.ne.s32.totalorder %s2212_s4, %s1875_s24  ;;  %p1880_p5 = scmp.lt.u32.totalorder %s2212_s4, %s2262_s2 }
 0x1d0   : > { %p1881_p11 = scmp.lt.u32.totalorder %s1879_s26, %s1875_s24  ;;  %p1883_p4 = scmp.lt.u32.totalorder %s1875_s24, %s2212_s4 }
 0x1d1   : > { %p1877_p2 = pnand %p1876_p9, %p2048_p12 }
 0x1d2   : > { %p1882_p1 = por %p1881_p11, %p1880_p5 }
 0x1d3   : > { %p1878_p0 = pneg %p1877_p2 }
 0x1d4   : > { %p1884_p6 = por %p1883_p4, %p1882_p1 }
 0x1d6   : > { %p1885_p8 = pnand %p1884_p6, %p1878_p0 }
 0x1d8   : > { %1888 = shalt.err (!%p1885_p8)
}
 0x1d9   : > { %s1940_s3 = smov 128   ;;  %s1941_s15 = smov 8  }
 0x1da   : > { %1618 = dma.vmem_to_hbm [thread:$0]  (%p2048_p12), %s2214_s22, 4096, %s2212_s4, %s1176_s5, %s1940_s3, %s1940_s3, %s1941_s15  }
 0x1db PF: > { %s1204_s17 = sand.u32 1, %s1919_s9   ;;  %p2277_p10 = scmp.ne.s32.totalorder %s2267_s16, 0 }
 0x1dc   : > { %p2278_p13 = scmp.ge.s32.totalorder %s1931_s12, 2  ;;  %s1205_s27 = scalar_lea.sflag [#allocation4], %s1204_s17 }
 0x1de   : > { %p1629_p3 = pnand %p2278_p13, %p2277_p10 }
 0x1e0   : > { %1914 = dma.done.wait (!%p1629_p3), %s1205_s27, 4096  }
 0x1e1   : > { %1916 = vsyncadd (!%p1629_p3), %s1205_s27, 4294963200  ;;  %p16_p7 = scmp.ge.s32.totalorder %s2013_s21, 4   ;;  %s2279_s9 = smov %s1923_s10 }
 0x1e2   : > { %s2280_s10 = smov %s1927_s11  ;;  %s2281_s11 = smov %s2044_s8 }
 0x1e3   : > { %s2282_s12 = smov %s2013_s21  ;;  %18 = sbr.rel (!%p16_p7) target bundleno = 6 (0x6), region = 77 }
 0x1ea   :  { %1210 = vsyncpa [#allocation3], 1 }
 0x1eb   :  { %1212 = vsyncpa [#allocation3 + $0x1], 1 }
 0x1ec   :  { %1213 = vsyncpa [#allocation6], 1 }
 0x1ed   :  { %1214 = vsyncpa [#allocation4], 1 }
 0x1ee   :  { %1216 = vsyncpa [#allocation4 + $0x1], 1 }

</bundles_post_ra>
